<compile_context>
chip_gen: v7x
topology: tpu7x:2x2x1
jax: 0.10.0
libtpu: 0.0.40
codegen_flags: <defaults>
</compile_context>

<pallas_src>
import jax
import jax.numpy as jnp
from jax.experimental import pallas as pl
from jax.experimental.pallas import tpu as pltpu


# ------------------------- helpers: padding / layout -------------------------
def _round_up(x, m):
    return (x + m - 1) // m * m


def _pick_tile_m(M, cap=512):
    """Largest multiple-of-8 divisor of M that is <= cap (M is a multiple of 8)."""
    t = min(M, cap)
    t -= t % 8
    t = max(t, 8)
    while t > 8 and M % t != 0:
        t -= 8
    return t


def _pick_chunk(S, TB, H, *, max_unroll=16, vmem_budget_bytes=8 << 20):
    """Timesteps per grid step: bounded by a VMEM budget (double-buffered gx
    in-block + h out-block, f32) and by unroll / vreg pressure (max_unroll)."""
    bytes_per_step = (TB * 4 * H + TB * H) * 4 * 2   # gx + hseq, double buffered
    cap = max(1, vmem_budget_bytes // max(bytes_per_step, 1))
    return max(1, min(max_unroll, cap, S))


def _reorder_gates_ifog(w, axis):
    """PyTorch gate order along `axis` is [i, f, g, o] (blocks of H).
    Reorder to [i, f, o, g] so the sigmoid lanes [0,3H) are contiguous."""
    i, f, g, o = jnp.split(w, 4, axis=axis)
    return jnp.concatenate([i, f, o, g], axis=axis)


# -------------------- kernel 1: batched input projection ---------------------
def _proj_kernel(x_ref, w_ref, b_ref, o_ref):
    # (tile_m, K) x (K, 4H) on the MXU + bias add; lane-dense 4H output.
    o_ref[...] = (
        jnp.dot(x_ref[...], w_ref[...], preferred_element_type=jnp.float32)
        + b_ref[...]
    ).astype(o_ref.dtype)


def input_projection(x_flat, w, b, *, out_dtype=jnp.float32):
    """x_flat: (M, K); w: (K, 4H); b: (1, 4H) -> (M, 4H). Tiled + pipelined."""
    M, K = x_flat.shape
    N = w.shape[1]
    tile_m = _pick_tile_m(M)
    # NOTE: for v5e, out_dtype=jnp.bfloat16 halves the gx HBM stream (cast back
    # to f32 inside the recurrent kernel); kept f32 here for exact checking.
    return pl.pallas_call(
        _proj_kernel,
        out_shape=jax.ShapeDtypeStruct((M, N), out_dtype),
        grid_spec=pltpu.PrefetchScalarGridSpec(
            num_scalar_prefetch=0,
            grid=(M // tile_m,),
            in_specs=[
                pl.BlockSpec((tile_m, K), lambda i: (i, 0)),
                pl.BlockSpec((K, N), lambda i: (0, 0)),
                pl.BlockSpec((1, N), lambda i: (0, 0)),
            ],
            out_specs=pl.BlockSpec((tile_m, N), lambda i: (i, 0)),
        ),
        compiler_params=pltpu.CompilerParams(
            dimension_semantics=("parallel",)),
    )(x_flat, w, b)


# ---------------- kernel 2: sequential recurrence (chunked) -------------------
def _lstm_chunk_body(gx_ref, whh_ref, h_scr, c_scr, hseq_ref,
                     *, chunk, H, S, need_mask):
    """Run `chunk` LSTM timesteps with h/c carried in VMEM scratch.
    Grid axes: (batch_tile, chunk_index) -> time axis is program_id(1)."""
    @pl.when(pl.program_id(1) == 0)
    def _():
        h_scr[...] = jnp.zeros_like(h_scr)
        c_scr[...] = jnp.zeros_like(c_scr)

    TB = h_scr.shape[0]
    H4 = 4 * H
    # lanes [0, 3H): sigmoid gates (i, f, o); lanes [3H, 4H): tanh gate (g).
    # Hoisted out of the loop (broadcasts are not CSE'd).
    sig_mask = jax.lax.broadcasted_iota(jnp.int32, (TB, H4), 1) < 3 * H
    base_t = pl.program_id(1) * chunk

    def step(t, carry):
        h_prev = h_scr[...]
        c_prev = c_scr[...]
        # gates = X_gates[t] + h_prev @ W_hh   (W_hh pre-transposed: (H, 4H))
        gates = gx_ref[t].astype(jnp.float32) + jnp.dot(
            h_prev, whh_ref[...], preferred_element_type=jnp.float32)
        # sigmoid(x) = 0.5*(1 + tanh(0.5*x)): ONE tanh pass covers all 4 gates.
        t_all = jnp.tanh(jnp.where(sig_mask, 0.5 * gates, gates))
        act = jnp.where(sig_mask, 0.5 + 0.5 * t_all, t_all)
        i_g = act[:, 0 * H:1 * H]
        f_g = act[:, 1 * H:2 * H]
        o_g = act[:, 2 * H:3 * H]
        g_g = act[:, 3 * H:4 * H]
        c_new = f_g * c_prev + i_g * g_g
        h_new = o_g * jnp.tanh(c_new)
        if need_mask:
            # S padded to a multiple of chunk: padded steps must not touch state
            # (f=sigmoid(0)=0.5 would otherwise decay c and corrupt the FC head).
            valid = (base_t + t) < S
            h_new = jnp.where(valid, h_new, h_prev)
            c_new = jnp.where(valid, c_new, c_prev)
        h_scr[...] = h_new
        c_scr[...] = c_new
        if hseq_ref is not None:        # last layer skips the h-seq writeback
            hseq_ref[t] = h_new.astype(hseq_ref.dtype)
        return carry

    jax.lax.fori_loop(0, chunk, step, 0, unroll=True)


def _make_mid_kernel(chunk, H, S, need_mask):
    def kernel(gx_ref, whh_ref, hseq_ref, h_scr, c_scr):
        _lstm_chunk_body(gx_ref, whh_ref, h_scr, c_scr, hseq_ref,
                         chunk=chunk, H=H, S=S, need_mask=need_mask)
    return kernel


def _make_last_kernel(chunk, H, S, need_mask):
    def kernel(gx_ref, whh_ref, wfc_ref, bfc_ref, y_ref, h_scr, c_scr):
        _lstm_chunk_body(gx_ref, whh_ref, h_scr, c_scr, None,
                         chunk=chunk, H=H, S=S, need_mask=need_mask)

        # Fold Linear(H -> 1) into the final grid step; no h_seq HBM roundtrip.
        @pl.when(pl.program_id(1) == pl.num_programs(1) - 1)
        def _():
            y_ref[...] = (
                jnp.dot(h_scr[...], wfc_ref[...],
                        preferred_element_type=jnp.float32)
                + bfc_ref[...]
            ).astype(y_ref.dtype)
    return kernel


def lstm_layer(gx, w_hh, *, chunk, S, batch_tile):
    """Intermediate layer: gx (S_pad, B_pad, 4H) -> h_seq (S_pad, B_pad, H)."""
    S_pad, B_pad, H4 = gx.shape
    H = H4 // 4
    need_mask = S_pad != S
    return pl.pallas_call(
        _make_mid_kernel(chunk, H, S, need_mask),
        out_shape=jax.ShapeDtypeStruct((S_pad, B_pad, H), jnp.float32),
        grid_spec=pltpu.PrefetchScalarGridSpec(
            num_scalar_prefetch=0,
            grid=(B_pad // batch_tile, S_pad // chunk),
            in_specs=[
                pl.BlockSpec((chunk, batch_tile, H4), lambda b, c: (c, b, 0)),
                # W_hh resident (constant index map); tiny at H=32 — for large H
                # store bf16 / single-buffer it to halve resident VMEM on v7x.
                pl.BlockSpec((H, H4), lambda b, c: (0, 0)),
            ],
            out_specs=pl.BlockSpec((chunk, batch_tile, H), lambda b, c: (c, b, 0)),
            scratch_shapes=[pltpu.VMEM((batch_tile, H), jnp.float32),   # h
                            pltpu.VMEM((batch_tile, H), jnp.float32)],  # c
        ),
        compiler_params=pltpu.CompilerParams(
            dimension_semantics=("parallel", "arbitrary")),
    )(gx, w_hh)


def lstm_layer_fused_fc(gx, w_hh, w_fc, b_fc, *, chunk, S, batch_tile):
    """Last layer: only the fused Linear(H->1) output y (B_pad, 1) is produced."""
    S_pad, B_pad, H4 = gx.shape
    H = H4 // 4
    need_mask = S_pad != S
    return pl.pallas_call(
        _make_last_kernel(chunk, H, S, need_mask),
        out_shape=jax.ShapeDtypeStruct((B_pad, 1), jnp.float32),
        grid_spec=pltpu.PrefetchScalarGridSpec(
            num_scalar_prefetch=0,
            grid=(B_pad // batch_tile, S_pad // chunk),
            in_specs=[
                pl.BlockSpec((chunk, batch_tile, H4), lambda b, c: (c, b, 0)),
                pl.BlockSpec((H, H4), lambda b, c: (0, 0)),
                pl.BlockSpec((H, 1), lambda b, c: (0, 0)),     # fc weight
                pl.BlockSpec((1, 1), lambda b, c: (0, 0)),     # fc bias
            ],
            out_specs=pl.BlockSpec((batch_tile, 1), lambda b, c: (b, 0)),
            scratch_shapes=[pltpu.VMEM((batch_tile, H), jnp.float32),
                            pltpu.VMEM((batch_tile, H), jnp.float32)],
        ),
        compiler_params=pltpu.CompilerParams(
            dimension_semantics=("parallel", "arbitrary")),
    )(gx, w_hh, w_fc, b_fc)


# --------------------------- parameters & wrapper -----------------------------
def init_params(key, input_size, hidden_size, layers):
    """PyTorch-layout LSTM/Linear params, uniform(-1/sqrt(H), 1/sqrt(H))."""
    bound = 1.0 / (hidden_size ** 0.5)
    params = {"lstm": [], "fc": None}
    for layer in range(layers):
        in_sz = input_size if layer == 0 else hidden_size
        key, k1, k2, k3, k4 = jax.random.split(key, 5)
        params["lstm"].append({
            "w_ih": jax.random.uniform(k1, (4 * hidden_size, in_sz), jnp.float32, -bound, bound),
            "w_hh": jax.random.uniform(k2, (4 * hidden_size, hidden_size), jnp.float32, -bound, bound),
            "b_ih": jax.random.uniform(k3, (4 * hidden_size,), jnp.float32, -bound, bound),
            "b_hh": jax.random.uniform(k4, (4 * hidden_size,), jnp.float32, -bound, bound),
        })
    key, k5, k6 = jax.random.split(key, 3)
    params["fc"] = {
        "w": jax.random.uniform(k5, (1, hidden_size), jnp.float32, -bound, bound),
        "b": jax.random.uniform(k6, (1,), jnp.float32, -bound, bound),
    }
    return params


def prepare_params(params):
    """One-time layout work: combine biases, reorder gates [i,f,g,o]->[i,f,o,g],
    and pre-transpose to (in,4H)/(H,4H).  No gate padding: gate axis is 4H."""
    prepped = {"lstm": [], "fc": None}
    for lp in params["lstm"]:
        w_ih_t = _reorder_gates_ifog(lp["w_ih"], axis=0).T            # (in, 4H)
        w_hh_t = _reorder_gates_ifog(lp["w_hh"], axis=0).T            # (H, 4H)
        b = _reorder_gates_ifog((lp["b_ih"] + lp["b_hh"]).reshape(1, -1), axis=1)
        prepped["lstm"].append({"w_ih": w_ih_t, "w_hh": w_hh_t, "b": b})
    prepped["fc"] = {"w": params["fc"]["w"].T,                        # (H, 1)
                     "b": params["fc"]["b"].reshape(1, 1)}
    return prepped


def rnn_forward(params, x_bsi, *, chunk=None, batch_tile=None):
    """x_bsi: (batch, seq, input_size) — same as the PyTorch forward input."""
    B, S, _ = x_bsi.shape
    H = params["lstm"][0]["w_hh"].shape[1]
    B_pad = _round_up(B, 8)                      # full sublanes

    if batch_tile is None:
        # Parallel batch axis (splits across TCs on megacore / v7x) when B is
        # large enough; single tile otherwise.
        batch_tile = B_pad // 2 if (B_pad >= 16 and B_pad % 16 == 0) else B_pad
    if chunk is None:
        chunk = _pick_chunk(S, batch_tile, H)
    S_pad = _round_up(S, chunk)                  # ragged S: padded + masked

    prep = prepare_params(params)

    # torch.transpose(input, 0, 1): (B, S, I) -> (S, B, I); pad batch/seq with 0.
    x = jnp.transpose(x_bsi, (1, 0, 2)).astype(jnp.float32)
    x = jnp.pad(x, ((0, S_pad - S), (0, B_pad - B), (0, 0)))

    h_seq = x
    y = None
    n_layers = len(prep["lstm"])
    for li, lp in enumerate(prep["lstm"]):
        Sp, Bp, in_dim = h_seq.shape
        # Hoisted input projection for all timesteps: one big MXU matmul.
        gx = input_projection(h_seq.reshape(Sp * Bp, in_dim), lp["w_ih"], lp["b"])
        gx = gx.reshape(Sp, Bp, 4 * H)
        if li < n_layers - 1:
            h_seq = lstm_layer(gx, lp["w_hh"], chunk=chunk, S=S,
                               batch_tile=batch_tile)
        else:
            y = lstm_layer_fused_fc(gx, lp["w_hh"], prep["fc"]["w"],
                                    prep["fc"]["b"], chunk=chunk, S=S,
                                    batch_tile=batch_tile)
    return y[:B, :]   # drop padded batch rows -> (B, 1)


# ------------------------------ pure-JAX reference ----------------------------
def rnn_reference(params, x_bsi):
    x = jnp.transpose(x_bsi, (1, 0, 2)).astype(jnp.float32)   # (S, B, I)
    _, B, _ = x.shape
    h_seq = x
    for lp in params["lstm"]:
        w_ih, w_hh = lp["w_ih"], lp["w_hh"]
        b = lp["b_ih"] + lp["b_hh"]
        H = w_hh.shape[1]

        def step(carry, x_t):
            h, c = carry
            gates = x_t @ w_ih.T + h @ w_hh.T + b
            i = jax.nn.sigmoid(gates[:, :H])
            f = jax.nn.sigmoid(gates[:, H:2 * H])
            g = jnp.tanh(gates[:, 2 * H:3 * H])
            o = jax.nn.sigmoid(gates[:, 3 * H:])
            c = f * c + i * g
            h = o * jnp.tanh(c)
            return (h, c), h

        init = (jnp.zeros((B, H), jnp.float32), jnp.zeros((B, H), jnp.float32))
        _, h_seq = jax.lax.scan(step, init, h_seq)
    return h_seq[-1] @ params["fc"]["w"].T + params["fc"]["b"]


# ------------------------------------ main ------------------------------------
if __name__ == "__main__":
    input_size, hidden_size, layers = 16, 32, 2
    batch, seq = 4, 8

    key = jax.random.PRNGKey(0)
    kx, kp = jax.random.split(key)
    x = jax.random.normal(kx, (batch, seq, input_size), jnp.float32)
    params = init_params(kp, input_size, hidden_size, layers)

    fwd = jax.jit(rnn_forward)
    out = fwd(params, x)
    jax.block_until_ready(out)
    assert out.shape == (batch, 1)

    ref = rnn_reference(params, x)
    assert jnp.allclose(out, ref, atol=2e-3, rtol=2e-2), (out, ref)

    print("KERNEL_OK")
</pallas_src>

<mosaic_0001>
module attributes {stable_mosaic.version = 11 : i64} {
  func.func @_proj_kernel(%arg0: i32, %arg1: memref<64x16xf32, #tpu.memory_space<vmem>>, %arg2: memref<16x128xf32, #tpu.memory_space<vmem>>, %arg3: memref<1x128xf32, #tpu.memory_space<vmem>>, %arg4: memref<64x128xf32, #tpu.memory_space<vmem>>) attributes {dimension_semantics = [#tpu.dimension_semantics<parallel>], iteration_bounds = array<i64: 1>, scalar_prefetch = 0 : i64, scratch_operands = 0 : i64, tpu.core_type = #tpu.core_type<tc>, window_params = [{transform_indices = @transform_0, window_bounds = array<i64: 64, 16>}, {pipeline_mode = #tpu.pipeline_mode<synchronous>, transform_indices = @transform_1, window_bounds = array<i64: 16, 128>}, {pipeline_mode = #tpu.pipeline_mode<synchronous>, transform_indices = @transform_2, window_bounds = array<i64: 1, 128>}, {transform_indices = @transform_3, window_bounds = array<i64: 64, 128>}]} {
    %c0 = arith.constant 0 : index
    %c0_0 = arith.constant 0 : index
    %0 = vector.load %arg1[%c0, %c0_0] : memref<64x16xf32, #tpu.memory_space<vmem>>, vector<64x16xf32>
    %c0_1 = arith.constant 0 : index
    %c0_2 = arith.constant 0 : index
    %1 = vector.load %arg2[%c0_1, %c0_2] : memref<16x128xf32, #tpu.memory_space<vmem>>, vector<16x128xf32>
    %cst = arith.constant dense<0.000000e+00> : vector<64x128xf32>
    %2 = tpu.matmul %0, %1, %cst {dimension_numbers = #tpu.dot_dimension_numbers<[1], [0], [0], [1], [0, 0, 1, 1], [], []>} : vector<64x16xf32>, vector<16x128xf32>, vector<64x128xf32> -> vector<64x128xf32>
    %c0_3 = arith.constant 0 : index
    %c0_4 = arith.constant 0 : index
    %3 = vector.load %arg3[%c0_3, %c0_4] : memref<1x128xf32, #tpu.memory_space<vmem>>, vector<1x128xf32>
    %4 = vector.broadcast %3 : vector<1x128xf32> to vector<64x128xf32>
    %5 = arith.addf %2, %4 : vector<64x128xf32>
    %c0_5 = arith.constant 0 : index
    %c0_6 = arith.constant 0 : index
    %6 = vector.load %arg4[%c0_5, %c0_6] : memref<64x128xf32, #tpu.memory_space<vmem>>, vector<64x128xf32>
    tpu.vector_store %arg4[%c0_5, %c0_6], %5 {strides = array<i32>} : memref<64x128xf32, #tpu.memory_space<vmem>>, vector<64x128xf32>,
    return
  }
  func.func @transform_0(%arg0: i32) -> (i32, i32) {
    %c0_i32 = arith.constant 0 : i32
    %c0_i32_0 = arith.constant 0 : i32
    return %arg0, %c0_i32 : i32, i32
  }
  func.func @transform_1(%arg0: i32) -> (i32, i32) {
    %c0_i32 = arith.constant 0 : i32
    %c0_i32_0 = arith.constant 0 : i32
    %c0_i32_1 = arith.constant 0 : i32
    return %c0_i32, %c0_i32_0 : i32, i32
  }
  func.func @transform_2(%arg0: i32) -> (i32, i32) {
    %c0_i32 = arith.constant 0 : i32
    %c0_i32_0 = arith.constant 0 : i32
    %c0_i32_1 = arith.constant 0 : i32
    return %c0_i32, %c0_i32_0 : i32, i32
  }
  func.func @transform_3(%arg0: i32) -> (i32, i32) {
    %c0_i32 = arith.constant 0 : i32
    %c0_i32_0 = arith.constant 0 : i32
    return %arg0, %c0_i32 : i32, i32
  }
}

module attributes {stable_mosaic.version = 11 : i64} {
  func.func @_proj_kernel(%arg0: i32, %arg1: memref<64x32xf32, #tpu.memory_space<vmem>>, %arg2: memref<32x128xf32, #tpu.memory_space<vmem>>, %arg3: memref<1x128xf32, #tpu.memory_space<vmem>>, %arg4: memref<64x128xf32, #tpu.memory_space<vmem>>) attributes {dimension_semantics = [#tpu.dimension_semantics<parallel>], iteration_bounds = array<i64: 1>, scalar_prefetch = 0 : i64, scratch_operands = 0 : i64, tpu.core_type = #tpu.core_type<tc>, window_params = [{transform_indices = @transform_0, window_bounds = array<i64: 64, 32>}, {pipeline_mode = #tpu.pipeline_mode<synchronous>, transform_indices = @transform_1, window_bounds = array<i64: 32, 128>}, {pipeline_mode = #tpu.pipeline_mode<synchronous>, transform_indices = @transform_2, window_bounds = array<i64: 1, 128>}, {transform_indices = @transform_3, window_bounds = array<i64: 64, 128>}]} {
    %c0 = arith.constant 0 : index
    %c0_0 = arith.constant 0 : index
    %0 = vector.load %arg1[%c0, %c0_0] : memref<64x32xf32, #tpu.memory_space<vmem>>, vector<64x32xf32>
    %c0_1 = arith.constant 0 : index
    %c0_2 = arith.constant 0 : index
    %1 = vector.load %arg2[%c0_1, %c0_2] : memref<32x128xf32, #tpu.memory_space<vmem>>, vector<32x128xf32>
    %cst = arith.constant dense<0.000000e+00> : vector<64x128xf32>
    %2 = tpu.matmul %0, %1, %cst {dimension_numbers = #tpu.dot_dimension_numbers<[1], [0], [0], [1], [0, 0, 1, 1], [], []>} : vector<64x32xf32>, vector<32x128xf32>, vector<64x128xf32> -> vector<64x128xf32>
    %c0_3 = arith.constant 0 : index
    %c0_4 = arith.constant 0 : index
    %3 = vector.load %arg3[%c0_3, %c0_4] : memref<1x128xf32, #tpu.memory_space<vmem>>, vector<1x128xf32>
    %4 = vector.broadcast %3 : vector<1x128xf32> to vector<64x128xf32>
    %5 = arith.addf %2, %4 : vector<64x128xf32>
    %c0_5 = arith.constant 0 : index
    %c0_6 = arith.constant 0 : index
    %6 = vector.load %arg4[%c0_5, %c0_6] : memref<64x128xf32, #tpu.memory_space<vmem>>, vector<64x128xf32>
    tpu.vector_store %arg4[%c0_5, %c0_6], %5 {strides = array<i32>} : memref<64x128xf32, #tpu.memory_space<vmem>>, vector<64x128xf32>,
    return
  }
  func.func @transform_0(%arg0: i32) -> (i32, i32) {
    %c0_i32 = arith.constant 0 : i32
    %c0_i32_0 = arith.constant 0 : i32
    return %arg0, %c0_i32 : i32, i32
  }
  func.func @transform_1(%arg0: i32) -> (i32, i32) {
    %c0_i32 = arith.constant 0 : i32
    %c0_i32_0 = arith.constant 0 : i32
    %c0_i32_1 = arith.constant 0 : i32
    return %c0_i32, %c0_i32_0 : i32, i32
  }
  func.func @transform_2(%arg0: i32) -> (i32, i32) {
    %c0_i32 = arith.constant 0 : i32
    %c0_i32_0 = arith.constant 0 : i32
    %c0_i32_1 = arith.constant 0 : i32
    return %c0_i32, %c0_i32_0 : i32, i32
  }
  func.func @transform_3(%arg0: i32) -> (i32, i32) {
    %c0_i32 = arith.constant 0 : i32
    %c0_i32_0 = arith.constant 0 : i32
    return %arg0, %c0_i32 : i32, i32
  }
}

module attributes {stable_mosaic.version = 11 : i64} {
  func.func @kernel(%arg0: i32, %arg1: i32, %arg2: memref<8x8x128xf32, #tpu.memory_space<vmem>>, %arg3: memref<32x128xf32, #tpu.memory_space<vmem>>, %arg4: memref<8x8x32xf32, #tpu.memory_space<vmem>>, %arg5: memref<8x32xf32, #tpu.memory_space<vmem>>, %arg6: memref<8x32xf32, #tpu.memory_space<vmem>>) attributes {dimension_semantics = [#tpu.dimension_semantics<parallel>, #tpu.dimension_semantics<arbitrary>], iteration_bounds = array<i64: 1, 1>, scalar_prefetch = 0 : i64, scratch_operands = 2 : i64, tpu.core_type = #tpu.core_type<tc>, window_params = [{transform_indices = @transform_0, window_bounds = array<i64: 8, 8, 128>}, {pipeline_mode = #tpu.pipeline_mode<synchronous>, transform_indices = @transform_1, window_bounds = array<i64: 32, 128>}, {transform_indices = @transform_2, window_bounds = array<i64: 8, 8, 32>}]} {
    %c0_i32 = arith.constant 0 : i32
    %0 = arith.cmpi eq, %arg1, %c0_i32 : i32
    %1 = arith.extui %0 : i1 to i32
    %c0_i32_0 = arith.constant 0 : i32
    %2 = arith.cmpi ne, %1, %c0_i32_0 : i32
    scf.if %2 {
      %cst_144 = arith.constant 0.000000e+00 : f32
      %262 = vector.broadcast %cst_144 : f32 to vector<8x32xf32>
      %c0_145 = arith.constant 0 : index
      %c0_146 = arith.constant 0 : index
      %263 = vector.load %arg5[%c0_145, %c0_146] : memref<8x32xf32, #tpu.memory_space<vmem>>, vector<8x32xf32>
      tpu.vector_store %arg5[%c0_145, %c0_146], %262 {strides = array<i32>} : memref<8x32xf32, #tpu.memory_space<vmem>>, vector<8x32xf32>,
      %cst_147 = arith.constant 0.000000e+00 : f32
      %264 = vector.broadcast %cst_147 : f32 to vector<8x32xf32>
      %c0_148 = arith.constant 0 : index
      %c0_149 = arith.constant 0 : index
      %265 = vector.load %arg6[%c0_148, %c0_149] : memref<8x32xf32, #tpu.memory_space<vmem>>, vector<8x32xf32>
      tpu.vector_store %arg6[%c0_148, %c0_149], %264 {strides = array<i32>} : memref<8x32xf32, #tpu.memory_space<vmem>>, vector<8x32xf32>,
    } else {
    }
    %3 = tpu.iota {dimensions = array<i32: 1>} : vector<8x128xi32>
    %c96_i32 = arith.constant 96 : i32
    %4 = vector.broadcast %c96_i32 : i32 to vector<8x128xi32>
    %5 = arith.cmpi slt, %3, %4 : vector<8x128xi32>
    %c0_i32_1 = arith.constant 0 : i32
    %c0 = arith.constant 0 : index
    %c0_2 = arith.constant 0 : index
    %6 = vector.load %arg5[%c0, %c0_2] : memref<8x32xf32, #tpu.memory_space<vmem>>, vector<8x32xf32>
    %c0_3 = arith.constant 0 : index
    %c0_4 = arith.constant 0 : index
    %7 = vector.load %arg6[%c0_3, %c0_4] : memref<8x32xf32, #tpu.memory_space<vmem>>, vector<8x32xf32>
    %8 = arith.index_cast %c0_i32_1 : i32 to index
    %c0_5 = arith.constant 0 : index
    %c0_6 = arith.constant 0 : index
    %9 = vector.load %arg2[%8, %c0_5, %c0_6] : memref<8x8x128xf32, #tpu.memory_space<vmem>>, vector<1x8x128xf32>
    %10 = vector.shape_cast %9 : vector<1x8x128xf32> to vector<8x128xf32>
    %c0_7 = arith.constant 0 : index
    %c0_8 = arith.constant 0 : index
    %11 = vector.load %arg3[%c0_7, %c0_8] : memref<32x128xf32, #tpu.memory_space<vmem>>, vector<32x128xf32>
    %cst = arith.constant dense<0.000000e+00> : vector<8x128xf32>
    %12 = tpu.matmul %6, %11, %cst {dimension_numbers = #tpu.dot_dimension_numbers<[1], [0], [0], [1], [0, 0, 1, 1], [], []>} : vector<8x32xf32>, vector<32x128xf32>, vector<8x128xf32> -> vector<8x128xf32>
    %13 = arith.addf %10, %12 : vector<8x128xf32>
    %cst_9 = arith.constant 5.000000e-01 : f32
    %14 = vector.broadcast %cst_9 : f32 to vector<8x128xf32>
    %15 = arith.mulf %14, %13 : vector<8x128xf32>
    %16 = arith.select %5, %15, %13 : vector<8x128xi1>, vector<8x128xf32>
    %17 = math.tanh %16 : vector<8x128xf32>
    %cst_10 = arith.constant 5.000000e-01 : f32
    %18 = vector.broadcast %cst_10 : f32 to vector<8x128xf32>
    %19 = arith.mulf %18, %17 : vector<8x128xf32>
    %cst_11 = arith.constant 5.000000e-01 : f32
    %20 = vector.broadcast %cst_11 : f32 to vector<8x128xf32>
    %21 = arith.addf %20, %19 : vector<8x128xf32>
    %22 = arith.select %5, %21, %17 : vector<8x128xi1>, vector<8x128xf32>
    %23 = vector.extract_strided_slice %22 {offsets = [0, 0], sizes = [8, 32], strides = [1, 1]} : vector<8x128xf32> to vector<8x32xf32>
    %24 = vector.extract_strided_slice %22 {offsets = [0, 32], sizes = [8, 32], strides = [1, 1]} : vector<8x128xf32> to vector<8x32xf32>
    %25 = vector.extract_strided_slice %22 {offsets = [0, 64], sizes = [8, 32], strides = [1, 1]} : vector<8x128xf32> to vector<8x32xf32>
    %26 = vector.extract_strided_slice %22 {offsets = [0, 96], sizes = [8, 32], strides = [1, 1]} : vector<8x128xf32> to vector<8x32xf32>
    %27 = arith.mulf %24, %7 : vector<8x32xf32>
    %28 = arith.mulf %23, %26 : vector<8x32xf32>
    %29 = arith.addf %27, %28 : vector<8x32xf32>
    %30 = math.tanh %29 : vector<8x32xf32>
    %31 = arith.mulf %25, %30 : vector<8x32xf32>
    %c0_12 = arith.constant 0 : index
    %c0_13 = arith.constant 0 : index
    %32 = vector.load %arg5[%c0_12, %c0_13] : memref<8x32xf32, #tpu.memory_space<vmem>>, vector<8x32xf32>
    tpu.vector_store %arg5[%c0_12, %c0_13], %31 {strides = array<i32>} : memref<8x32xf32, #tpu.memory_space<vmem>>, vector<8x32xf32>,
    %c0_14 = arith.constant 0 : index
    %c0_15 = arith.constant 0 : index
    %33 = vector.load %arg6[%c0_14, %c0_15] : memref<8x32xf32, #tpu.memory_space<vmem>>, vector<8x32xf32>
    tpu.vector_store %arg6[%c0_14, %c0_15], %29 {strides = array<i32>} : memref<8x32xf32, #tpu.memory_space<vmem>>, vector<8x32xf32>,
    %34 = arith.index_cast %c0_i32_1 : i32 to index
    %c0_16 = arith.constant 0 : index
    %c0_17 = arith.constant 0 : index
    %35 = vector.load %arg4[%34, %c0_16, %c0_17] : memref<8x8x32xf32, #tpu.memory_space<vmem>>, vector<1x8x32xf32>
    %36 = vector.shape_cast %35 : vector<1x8x32xf32> to vector<8x32xf32>
    %37 = vector.shape_cast %31 : vector<8x32xf32> to vector<1x8x32xf32>
    tpu.vector_store %arg4[%34, %c0_16, %c0_17], %37 {strides = array<i32>} : memref<8x8x32xf32, #tpu.memory_space<vmem>>, vector<1x8x32xf32>,
    %c1_i32 = arith.constant 1 : i32
    %c0_18 = arith.constant 0 : index
    %c0_19 = arith.constant 0 : index
    %38 = vector.load %arg5[%c0_18, %c0_19] : memref<8x32xf32, #tpu.memory_space<vmem>>, vector<8x32xf32>
    %c0_20 = arith.constant 0 : index
    %c0_21 = arith.constant 0 : index
    %39 = vector.load %arg6[%c0_20, %c0_21] : memref<8x32xf32, #tpu.memory_space<vmem>>, vector<8x32xf32>
    %40 = arith.index_cast %c1_i32 : i32 to index
    %c0_22 = arith.constant 0 : index
    %c0_23 = arith.constant 0 : index
    %41 = vector.load %arg2[%40, %c0_22, %c0_23] : memref<8x8x128xf32, #tpu.memory_space<vmem>>, vector<1x8x128xf32>
    %42 = vector.shape_cast %41 : vector<1x8x128xf32> to vector<8x128xf32>
    %c0_24 = arith.constant 0 : index
    %c0_25 = arith.constant 0 : index
    %43 = vector.load %arg3[%c0_24, %c0_25] : memref<32x128xf32, #tpu.memory_space<vmem>>, vector<32x128xf32>
    %cst_26 = arith.constant dense<0.000000e+00> : vector<8x128xf32>
    %44 = tpu.matmul %38, %43, %cst_26 {dimension_numbers = #tpu.dot_dimension_numbers<[1], [0], [0], [1], [0, 0, 1, 1], [], []>} : vector<8x32xf32>, vector<32x128xf32>, vector<8x128xf32> -> vector<8x128xf32>
    %45 = arith.addf %42, %44 : vector<8x128xf32>
    %cst_27 = arith.constant 5.000000e-01 : f32
    %46 = vector.broadcast %cst_27 : f32 to vector<8x128xf32>
    %47 = arith.mulf %46, %45 : vector<8x128xf32>
    %48 = arith.select %5, %47, %45 : vector<8x128xi1>, vector<8x128xf32>
    %49 = math.tanh %48 : vector<8x128xf32>
    %cst_28 = arith.constant 5.000000e-01 : f32
    %50 = vector.broadcast %cst_28 : f32 to vector<8x128xf32>
    %51 = arith.mulf %50, %49 : vector<8x128xf32>
    %cst_29 = arith.constant 5.000000e-01 : f32
    %52 = vector.broadcast %cst_29 : f32 to vector<8x128xf32>
    %53 = arith.addf %52, %51 : vector<8x128xf32>
    %54 = arith.select %5, %53, %49 : vector<8x128xi1>, vector<8x128xf32>
    %55 = vector.extract_strided_slice %54 {offsets = [0, 0], sizes = [8, 32], strides = [1, 1]} : vector<8x128xf32> to vector<8x32xf32>
    %56 = vector.extract_strided_slice %54 {offsets = [0, 32], sizes = [8, 32], strides = [1, 1]} : vector<8x128xf32> to vector<8x32xf32>
    %57 = vector.extract_strided_slice %54 {offsets = [0, 64], sizes = [8, 32], strides = [1, 1]} : vector<8x128xf32> to vector<8x32xf32>
    %58 = vector.extract_strided_slice %54 {offsets = [0, 96], sizes = [8, 32], strides = [1, 1]} : vector<8x128xf32> to vector<8x32xf32>
    %59 = arith.mulf %56, %39 : vector<8x32xf32>
    %60 = arith.mulf %55, %58 : vector<8x32xf32>
    %61 = arith.addf %59, %60 : vector<8x32xf32>
    %62 = math.tanh %61 : vector<8x32xf32>
    %63 = arith.mulf %57, %62 : vector<8x32xf32>
    %c0_30 = arith.constant 0 : index
    %c0_31 = arith.constant 0 : index
    %64 = vector.load %arg5[%c0_30, %c0_31] : memref<8x32xf32, #tpu.memory_space<vmem>>, vector<8x32xf32>
    tpu.vector_store %arg5[%c0_30, %c0_31], %63 {strides = array<i32>} : memref<8x32xf32, #tpu.memory_space<vmem>>, vector<8x32xf32>,
    %c0_32 = arith.constant 0 : index
    %c0_33 = arith.constant 0 : index
    %65 = vector.load %arg6[%c0_32, %c0_33] : memref<8x32xf32, #tpu.memory_space<vmem>>, vector<8x32xf32>
    tpu.vector_store %arg6[%c0_32, %c0_33], %61 {strides = array<i32>} : memref<8x32xf32, #tpu.memory_space<vmem>>, vector<8x32xf32>,
    %66 = arith.index_cast %c1_i32 : i32 to index
    %c0_34 = arith.constant 0 : index
    %c0_35 = arith.constant 0 : index
    %67 = vector.load %arg4[%66, %c0_34, %c0_35] : memref<8x8x32xf32, #tpu.memory_space<vmem>>, vector<1x8x32xf32>
    %68 = vector.shape_cast %67 : vector<1x8x32xf32> to vector<8x32xf32>
    %69 = vector.shape_cast %63 : vector<8x32xf32> to vector<1x8x32xf32>
    tpu.vector_store %arg4[%66, %c0_34, %c0_35], %69 {strides = array<i32>} : memref<8x8x32xf32, #tpu.memory_space<vmem>>, vector<1x8x32xf32>,
    %c2_i32 = arith.constant 2 : i32
    %c0_36 = arith.constant 0 : index
    %c0_37 = arith.constant 0 : index
    %70 = vector.load %arg5[%c0_36, %c0_37] : memref<8x32xf32, #tpu.memory_space<vmem>>, vector<8x32xf32>
    %c0_38 = arith.constant 0 : index
    %c0_39 = arith.constant 0 : index
    %71 = vector.load %arg6[%c0_38, %c0_39] : memref<8x32xf32, #tpu.memory_space<vmem>>, vector<8x32xf32>
    %72 = arith.index_cast %c2_i32 : i32 to index
    %c0_40 = arith.constant 0 : index
    %c0_41 = arith.constant 0 : index
    %73 = vector.load %arg2[%72, %c0_40, %c0_41] : memref<8x8x128xf32, #tpu.memory_space<vmem>>, vector<1x8x128xf32>
    %74 = vector.shape_cast %73 : vector<1x8x128xf32> to vector<8x128xf32>
    %c0_42 = arith.constant 0 : index
    %c0_43 = arith.constant 0 : index
    %75 = vector.load %arg3[%c0_42, %c0_43] : memref<32x128xf32, #tpu.memory_space<vmem>>, vector<32x128xf32>
    %cst_44 = arith.constant dense<0.000000e+00> : vector<8x128xf32>
    %76 = tpu.matmul %70, %75, %cst_44 {dimension_numbers = #tpu.dot_dimension_numbers<[1], [0], [0], [1], [0, 0, 1, 1], [], []>} : vector<8x32xf32>, vector<32x128xf32>, vector<8x128xf32> -> vector<8x128xf32>
    %77 = arith.addf %74, %76 : vector<8x128xf32>
    %cst_45 = arith.constant 5.000000e-01 : f32
    %78 = vector.broadcast %cst_45 : f32 to vector<8x128xf32>
    %79 = arith.mulf %78, %77 : vector<8x128xf32>
    %80 = arith.select %5, %79, %77 : vector<8x128xi1>, vector<8x128xf32>
    %81 = math.tanh %80 : vector<8x128xf32>
    %cst_46 = arith.constant 5.000000e-01 : f32
    %82 = vector.broadcast %cst_46 : f32 to vector<8x128xf32>
    %83 = arith.mulf %82, %81 : vector<8x128xf32>
    %cst_47 = arith.constant 5.000000e-01 : f32
    %84 = vector.broadcast %cst_47 : f32 to vector<8x128xf32>
    %85 = arith.addf %84, %83 : vector<8x128xf32>
    %86 = arith.select %5, %85, %81 : vector<8x128xi1>, vector<8x128xf32>
    %87 = vector.extract_strided_slice %86 {offsets = [0, 0], sizes = [8, 32], strides = [1, 1]} : vector<8x128xf32> to vector<8x32xf32>
    %88 = vector.extract_strided_slice %86 {offsets = [0, 32], sizes = [8, 32], strides = [1, 1]} : vector<8x128xf32> to vector<8x32xf32>
    %89 = vector.extract_strided_slice %86 {offsets = [0, 64], sizes = [8, 32], strides = [1, 1]} : vector<8x128xf32> to vector<8x32xf32>
    %90 = vector.extract_strided_slice %86 {offsets = [0, 96], sizes = [8, 32], strides = [1, 1]} : vector<8x128xf32> to vector<8x32xf32>
    %91 = arith.mulf %88, %71 : vector<8x32xf32>
    %92 = arith.mulf %87, %90 : vector<8x32xf32>
    %93 = arith.addf %91, %92 : vector<8x32xf32>
    %94 = math.tanh %93 : vector<8x32xf32>
    %95 = arith.mulf %89, %94 : vector<8x32xf32>
    %c0_48 = arith.constant 0 : index
    %c0_49 = arith.constant 0 : index
    %96 = vector.load %arg5[%c0_48, %c0_49] : memref<8x32xf32, #tpu.memory_space<vmem>>, vector<8x32xf32>
    tpu.vector_store %arg5[%c0_48, %c0_49], %95 {strides = array<i32>} : memref<8x32xf32, #tpu.memory_space<vmem>>, vector<8x32xf32>,
    %c0_50 = arith.constant 0 : index
    %c0_51 = arith.constant 0 : index
    %97 = vector.load %arg6[%c0_50, %c0_51] : memref<8x32xf32, #tpu.memory_space<vmem>>, vector<8x32xf32>
    tpu.vector_store %arg6[%c0_50, %c0_51], %93 {strides = array<i32>} : memref<8x32xf32, #tpu.memory_space<vmem>>, vector<8x32xf32>,
    %98 = arith.index_cast %c2_i32 : i32 to index
    %c0_52 = arith.constant 0 : index
    %c0_53 = arith.constant 0 : index
    %99 = vector.load %arg4[%98, %c0_52, %c0_53] : memref<8x8x32xf32, #tpu.memory_space<vmem>>, vector<1x8x32xf32>
    %100 = vector.shape_cast %99 : vector<1x8x32xf32> to vector<8x32xf32>
    %101 = vector.shape_cast %95 : vector<8x32xf32> to vector<1x8x32xf32>
    tpu.vector_store %arg4[%98, %c0_52, %c0_53], %101 {strides = array<i32>} : memref<8x8x32xf32, #tpu.memory_space<vmem>>, vector<1x8x32xf32>,
    %c3_i32 = arith.constant 3 : i32
    %c0_54 = arith.constant 0 : index
    %c0_55 = arith.constant 0 : index
    %102 = vector.load %arg5[%c0_54, %c0_55] : memref<8x32xf32, #tpu.memory_space<vmem>>, vector<8x32xf32>
    %c0_56 = arith.constant 0 : index
    %c0_57 = arith.constant 0 : index
    %103 = vector.load %arg6[%c0_56, %c0_57] : memref<8x32xf32, #tpu.memory_space<vmem>>, vector<8x32xf32>
    %104 = arith.index_cast %c3_i32 : i32 to index
    %c0_58 = arith.constant 0 : index
    %c0_59 = arith.constant 0 : index
    %105 = vector.load %arg2[%104, %c0_58, %c0_59] : memref<8x8x128xf32, #tpu.memory_space<vmem>>, vector<1x8x128xf32>
    %106 = vector.shape_cast %105 : vector<1x8x128xf32> to vector<8x128xf32>
    %c0_60 = arith.constant 0 : index
    %c0_61 = arith.constant 0 : index
    %107 = vector.load %arg3[%c0_60, %c0_61] : memref<32x128xf32, #tpu.memory_space<vmem>>, vector<32x128xf32>
    %cst_62 = arith.constant dense<0.000000e+00> : vector<8x128xf32>
    %108 = tpu.matmul %102, %107, %cst_62 {dimension_numbers = #tpu.dot_dimension_numbers<[1], [0], [0], [1], [0, 0, 1, 1], [], []>} : vector<8x32xf32>, vector<32x128xf32>, vector<8x128xf32> -> vector<8x128xf32>
    %109 = arith.addf %106, %108 : vector<8x128xf32>
    %cst_63 = arith.constant 5.000000e-01 : f32
    %110 = vector.broadcast %cst_63 : f32 to vector<8x128xf32>
    %111 = arith.mulf %110, %109 : vector<8x128xf32>
    %112 = arith.select %5, %111, %109 : vector<8x128xi1>, vector<8x128xf32>
    %113 = math.tanh %112 : vector<8x128xf32>
    %cst_64 = arith.constant 5.000000e-01 : f32
    %114 = vector.broadcast %cst_64 : f32 to vector<8x128xf32>
    %115 = arith.mulf %114, %113 : vector<8x128xf32>
    %cst_65 = arith.constant 5.000000e-01 : f32
    %116 = vector.broadcast %cst_65 : f32 to vector<8x128xf32>
    %117 = arith.addf %116, %115 : vector<8x128xf32>
    %118 = arith.select %5, %117, %113 : vector<8x128xi1>, vector<8x128xf32>
    %119 = vector.extract_strided_slice %118 {offsets = [0, 0], sizes = [8, 32], strides = [1, 1]} : vector<8x128xf32> to vector<8x32xf32>
    %120 = vector.extract_strided_slice %118 {offsets = [0, 32], sizes = [8, 32], strides = [1, 1]} : vector<8x128xf32> to vector<8x32xf32>
    %121 = vector.extract_strided_slice %118 {offsets = [0, 64], sizes = [8, 32], strides = [1, 1]} : vector<8x128xf32> to vector<8x32xf32>
    %122 = vector.extract_strided_slice %118 {offsets = [0, 96], sizes = [8, 32], strides = [1, 1]} : vector<8x128xf32> to vector<8x32xf32>
    %123 = arith.mulf %120, %103 : vector<8x32xf32>
    %124 = arith.mulf %119, %122 : vector<8x32xf32>
    %125 = arith.addf %123, %124 : vector<8x32xf32>
    %126 = math.tanh %125 : vector<8x32xf32>
    %127 = arith.mulf %121, %126 : vector<8x32xf32>
    %c0_66 = arith.constant 0 : index
    %c0_67 = arith.constant 0 : index
    %128 = vector.load %arg5[%c0_66, %c0_67] : memref<8x32xf32, #tpu.memory_space<vmem>>, vector<8x32xf32>
    tpu.vector_store %arg5[%c0_66, %c0_67], %127 {strides = array<i32>} : memref<8x32xf32, #tpu.memory_space<vmem>>, vector<8x32xf32>,
    %c0_68 = arith.constant 0 : index
    %c0_69 = arith.constant 0 : index
    %129 = vector.load %arg6[%c0_68, %c0_69] : memref<8x32xf32, #tpu.memory_space<vmem>>, vector<8x32xf32>
    tpu.vector_store %arg6[%c0_68, %c0_69], %125 {strides = array<i32>} : memref<8x32xf32, #tpu.memory_space<vmem>>, vector<8x32xf32>,
    %130 = arith.index_cast %c3_i32 : i32 to index
    %c0_70 = arith.constant 0 : index
    %c0_71 = arith.constant 0 : index
    %131 = vector.load %arg4[%130, %c0_70, %c0_71] : memref<8x8x32xf32, #tpu.memory_space<vmem>>, vector<1x8x32xf32>
    %132 = vector.shape_cast %131 : vector<1x8x32xf32> to vector<8x32xf32>
    %133 = vector.shape_cast %127 : vector<8x32xf32> to vector<1x8x32xf32>
    tpu.vector_store %arg4[%130, %c0_70, %c0_71], %133 {strides = array<i32>} : memref<8x8x32xf32, #tpu.memory_space<vmem>>, vector<1x8x32xf32>,
    %c4_i32 = arith.constant 4 : i32
    %c0_72 = arith.constant 0 : index
    %c0_73 = arith.constant 0 : index
    %134 = vector.load %arg5[%c0_72, %c0_73] : memref<8x32xf32, #tpu.memory_space<vmem>>, vector<8x32xf32>
    %c0_74 = arith.constant 0 : index
    %c0_75 = arith.constant 0 : index
    %135 = vector.load %arg6[%c0_74, %c0_75] : memref<8x32xf32, #tpu.memory_space<vmem>>, vector<8x32xf32>
    %136 = arith.index_cast %c4_i32 : i32 to index
    %c0_76 = arith.constant 0 : index
    %c0_77 = arith.constant 0 : index
    %137 = vector.load %arg2[%136, %c0_76, %c0_77] : memref<8x8x128xf32, #tpu.memory_space<vmem>>, vector<1x8x128xf32>
    %138 = vector.shape_cast %137 : vector<1x8x128xf32> to vector<8x128xf32>
    %c0_78 = arith.constant 0 : index
    %c0_79 = arith.constant 0 : index
    %139 = vector.load %arg3[%c0_78, %c0_79] : memref<32x128xf32, #tpu.memory_space<vmem>>, vector<32x128xf32>
    %cst_80 = arith.constant dense<0.000000e+00> : vector<8x128xf32>
    %140 = tpu.matmul %134, %139, %cst_80 {dimension_numbers = #tpu.dot_dimension_numbers<[1], [0], [0], [1], [0, 0, 1, 1], [], []>} : vector<8x32xf32>, vector<32x128xf32>, vector<8x128xf32> -> vector<8x128xf32>
    %141 = arith.addf %138, %140 : vector<8x128xf32>
    %cst_81 = arith.constant 5.000000e-01 : f32
    %142 = vector.broadcast %cst_81 : f32 to vector<8x128xf32>
    %143 = arith.mulf %142, %141 : vector<8x128xf32>
    %144 = arith.select %5, %143, %141 : vector<8x128xi1>, vector<8x128xf32>
    %145 = math.tanh %144 : vector<8x128xf32>
    %cst_82 = arith.constant 5.000000e-01 : f32
    %146 = vector.broadcast %cst_82 : f32 to vector<8x128xf32>
    %147 = arith.mulf %146, %145 : vector<8x128xf32>
    %cst_83 = arith.constant 5.000000e-01 : f32
    %148 = vector.broadcast %cst_83 : f32 to vector<8x128xf32>
    %149 = arith.addf %148, %147 : vector<8x128xf32>
    %150 = arith.select %5, %149, %145 : vector<8x128xi1>, vector<8x128xf32>
    %151 = vector.extract_strided_slice %150 {offsets = [0, 0], sizes = [8, 32], strides = [1, 1]} : vector<8x128xf32> to vector<8x32xf32>
    %152 = vector.extract_strided_slice %150 {offsets = [0, 32], sizes = [8, 32], strides = [1, 1]} : vector<8x128xf32> to vector<8x32xf32>
    %153 = vector.extract_strided_slice %150 {offsets = [0, 64], sizes = [8, 32], strides = [1, 1]} : vector<8x128xf32> to vector<8x32xf32>
    %154 = vector.extract_strided_slice %150 {offsets = [0, 96], sizes = [8, 32], strides = [1, 1]} : vector<8x128xf32> to vector<8x32xf32>
    %155 = arith.mulf %152, %135 : vector<8x32xf32>
    %156 = arith.mulf %151, %154 : vector<8x32xf32>
    %157 = arith.addf %155, %156 : vector<8x32xf32>
    %158 = math.tanh %157 : vector<8x32xf32>
    %159 = arith.mulf %153, %158 : vector<8x32xf32>
    %c0_84 = arith.constant 0 : index
    %c0_85 = arith.constant 0 : index
    %160 = vector.load %arg5[%c0_84, %c0_85] : memref<8x32xf32, #tpu.memory_space<vmem>>, vector<8x32xf32>
    tpu.vector_store %arg5[%c0_84, %c0_85], %159 {strides = array<i32>} : memref<8x32xf32, #tpu.memory_space<vmem>>, vector<8x32xf32>,
    %c0_86 = arith.constant 0 : index
    %c0_87 = arith.constant 0 : index
    %161 = vector.load %arg6[%c0_86, %c0_87] : memref<8x32xf32, #tpu.memory_space<vmem>>, vector<8x32xf32>
    tpu.vector_store %arg6[%c0_86, %c0_87], %157 {strides = array<i32>} : memref<8x32xf32, #tpu.memory_space<vmem>>, vector<8x32xf32>,
    %162 = arith.index_cast %c4_i32 : i32 to index
    %c0_88 = arith.constant 0 : index
    %c0_89 = arith.constant 0 : index
    %163 = vector.load %arg4[%162, %c0_88, %c0_89] : memref<8x8x32xf32, #tpu.memory_space<vmem>>, vector<1x8x32xf32>
    %164 = vector.shape_cast %163 : vector<1x8x32xf32> to vector<8x32xf32>
    %165 = vector.shape_cast %159 : vector<8x32xf32> to vector<1x8x32xf32>
    tpu.vector_store %arg4[%162, %c0_88, %c0_89], %165 {strides = array<i32>} : memref<8x8x32xf32, #tpu.memory_space<vmem>>, vector<1x8x32xf32>,
    %c5_i32 = arith.constant 5 : i32
    %c0_90 = arith.constant 0 : index
    %c0_91 = arith.constant 0 : index
    %166 = vector.load %arg5[%c0_90, %c0_91] : memref<8x32xf32, #tpu.memory_space<vmem>>, vector<8x32xf32>
    %c0_92 = arith.constant 0 : index
    %c0_93 = arith.constant 0 : index
    %167 = vector.load %arg6[%c0_92, %c0_93] : memref<8x32xf32, #tpu.memory_space<vmem>>, vector<8x32xf32>
    %168 = arith.index_cast %c5_i32 : i32 to index
    %c0_94 = arith.constant 0 : index
    %c0_95 = arith.constant 0 : index
    %169 = vector.load %arg2[%168, %c0_94, %c0_95] : memref<8x8x128xf32, #tpu.memory_space<vmem>>, vector<1x8x128xf32>
    %170 = vector.shape_cast %169 : vector<1x8x128xf32> to vector<8x128xf32>
    %c0_96 = arith.constant 0 : index
    %c0_97 = arith.constant 0 : index
    %171 = vector.load %arg3[%c0_96, %c0_97] : memref<32x128xf32, #tpu.memory_space<vmem>>, vector<32x128xf32>
    %cst_98 = arith.constant dense<0.000000e+00> : vector<8x128xf32>
    %172 = tpu.matmul %166, %171, %cst_98 {dimension_numbers = #tpu.dot_dimension_numbers<[1], [0], [0], [1], [0, 0, 1, 1], [], []>} : vector<8x32xf32>, vector<32x128xf32>, vector<8x128xf32> -> vector<8x128xf32>
    %173 = arith.addf %170, %172 : vector<8x128xf32>
    %cst_99 = arith.constant 5.000000e-01 : f32
    %174 = vector.broadcast %cst_99 : f32 to vector<8x128xf32>
    %175 = arith.mulf %174, %173 : vector<8x128xf32>
    %176 = arith.select %5, %175, %173 : vector<8x128xi1>, vector<8x128xf32>
    %177 = math.tanh %176 : vector<8x128xf32>
    %cst_100 = arith.constant 5.000000e-01 : f32
    %178 = vector.broadcast %cst_100 : f32 to vector<8x128xf32>
    %179 = arith.mulf %178, %177 : vector<8x128xf32>
    %cst_101 = arith.constant 5.000000e-01 : f32
    %180 = vector.broadcast %cst_101 : f32 to vector<8x128xf32>
    %181 = arith.addf %180, %179 : vector<8x128xf32>
    %182 = arith.select %5, %181, %177 : vector<8x128xi1>, vector<8x128xf32>
    %183 = vector.extract_strided_slice %182 {offsets = [0, 0], sizes = [8, 32], strides = [1, 1]} : vector<8x128xf32> to vector<8x32xf32>
    %184 = vector.extract_strided_slice %182 {offsets = [0, 32], sizes = [8, 32], strides = [1, 1]} : vector<8x128xf32> to vector<8x32xf32>
    %185 = vector.extract_strided_slice %182 {offsets = [0, 64], sizes = [8, 32], strides = [1, 1]} : vector<8x128xf32> to vector<8x32xf32>
    %186 = vector.extract_strided_slice %182 {offsets = [0, 96], sizes = [8, 32], strides = [1, 1]} : vector<8x128xf32> to vector<8x32xf32>
    %187 = arith.mulf %184, %167 : vector<8x32xf32>
    %188 = arith.mulf %183, %186 : vector<8x32xf32>
    %189 = arith.addf %187, %188 : vector<8x32xf32>
    %190 = math.tanh %189 : vector<8x32xf32>
    %191 = arith.mulf %185, %190 : vector<8x32xf32>
    %c0_102 = arith.constant 0 : index
    %c0_103 = arith.constant 0 : index
    %192 = vector.load %arg5[%c0_102, %c0_103] : memref<8x32xf32, #tpu.memory_space<vmem>>, vector<8x32xf32>
    tpu.vector_store %arg5[%c0_102, %c0_103], %191 {strides = array<i32>} : memref<8x32xf32, #tpu.memory_space<vmem>>, vector<8x32xf32>,
    %c0_104 = arith.constant 0 : index
    %c0_105 = arith.constant 0 : index
    %193 = vector.load %arg6[%c0_104, %c0_105] : memref<8x32xf32, #tpu.memory_space<vmem>>, vector<8x32xf32>
    tpu.vector_store %arg6[%c0_104, %c0_105], %189 {strides = array<i32>} : memref<8x32xf32, #tpu.memory_space<vmem>>, vector<8x32xf32>,
    %194 = arith.index_cast %c5_i32 : i32 to index
    %c0_106 = arith.constant 0 : index
    %c0_107 = arith.constant 0 : index
    %195 = vector.load %arg4[%194, %c0_106, %c0_107] : memref<8x8x32xf32, #tpu.memory_space<vmem>>, vector<1x8x32xf32>
    %196 = vector.shape_cast %195 : vector<1x8x32xf32> to vector<8x32xf32>
    %197 = vector.shape_cast %191 : vector<8x32xf32> to vector<1x8x32xf32>
    tpu.vector_store %arg4[%194, %c0_106, %c0_107], %197 {strides = array<i32>} : memref<8x8x32xf32, #tpu.memory_space<vmem>>, vector<1x8x32xf32>,
    %c6_i32 = arith.constant 6 : i32
    %c0_108 = arith.constant 0 : index
    %c0_109 = arith.constant 0 : index
    %198 = vector.load %arg5[%c0_108, %c0_109] : memref<8x32xf32, #tpu.memory_space<vmem>>, vector<8x32xf32>
    %c0_110 = arith.constant 0 : index
    %c0_111 = arith.constant 0 : index
    %199 = vector.load %arg6[%c0_110, %c0_111] : memref<8x32xf32, #tpu.memory_space<vmem>>, vector<8x32xf32>
    %200 = arith.index_cast %c6_i32 : i32 to index
    %c0_112 = arith.constant 0 : index
    %c0_113 = arith.constant 0 : index
    %201 = vector.load %arg2[%200, %c0_112, %c0_113] : memref<8x8x128xf32, #tpu.memory_space<vmem>>, vector<1x8x128xf32>
    %202 = vector.shape_cast %201 : vector<1x8x128xf32> to vector<8x128xf32>
    %c0_114 = arith.constant 0 : index
    %c0_115 = arith.constant 0 : index
    %203 = vector.load %arg3[%c0_114, %c0_115] : memref<32x128xf32, #tpu.memory_space<vmem>>, vector<32x128xf32>
    %cst_116 = arith.constant dense<0.000000e+00> : vector<8x128xf32>
    %204 = tpu.matmul %198, %203, %cst_116 {dimension_numbers = #tpu.dot_dimension_numbers<[1], [0], [0], [1], [0, 0, 1, 1], [], []>} : vector<8x32xf32>, vector<32x128xf32>, vector<8x128xf32> -> vector<8x128xf32>
    %205 = arith.addf %202, %204 : vector<8x128xf32>
    %cst_117 = arith.constant 5.000000e-01 : f32
    %206 = vector.broadcast %cst_117 : f32 to vector<8x128xf32>
    %207 = arith.mulf %206, %205 : vector<8x128xf32>
    %208 = arith.select %5, %207, %205 : vector<8x128xi1>, vector<8x128xf32>
    %209 = math.tanh %208 : vector<8x128xf32>
    %cst_118 = arith.constant 5.000000e-01 : f32
    %210 = vector.broadcast %cst_118 : f32 to vector<8x128xf32>
    %211 = arith.mulf %210, %209 : vector<8x128xf32>
    %cst_119 = arith.constant 5.000000e-01 : f32
    %212 = vector.broadcast %cst_119 : f32 to vector<8x128xf32>
    %213 = arith.addf %212, %211 : vector<8x128xf32>
    %214 = arith.select %5, %213, %209 : vector<8x128xi1>, vector<8x128xf32>
    %215 = vector.extract_strided_slice %214 {offsets = [0, 0], sizes = [8, 32], strides = [1, 1]} : vector<8x128xf32> to vector<8x32xf32>
    %216 = vector.extract_strided_slice %214 {offsets = [0, 32], sizes = [8, 32], strides = [1, 1]} : vector<8x128xf32> to vector<8x32xf32>
    %217 = vector.extract_strided_slice %214 {offsets = [0, 64], sizes = [8, 32], strides = [1, 1]} : vector<8x128xf32> to vector<8x32xf32>
    %218 = vector.extract_strided_slice %214 {offsets = [0, 96], sizes = [8, 32], strides = [1, 1]} : vector<8x128xf32> to vector<8x32xf32>
    %219 = arith.mulf %216, %199 : vector<8x32xf32>
    %220 = arith.mulf %215, %218 : vector<8x32xf32>
    %221 = arith.addf %219, %220 : vector<8x32xf32>
    %222 = math.tanh %221 : vector<8x32xf32>
    %223 = arith.mulf %217, %222 : vector<8x32xf32>
    %c0_120 = arith.constant 0 : index
    %c0_121 = arith.constant 0 : index
    %224 = vector.load %arg5[%c0_120, %c0_121] : memref<8x32xf32, #tpu.memory_space<vmem>>, vector<8x32xf32>
    tpu.vector_store %arg5[%c0_120, %c0_121], %223 {strides = array<i32>} : memref<8x32xf32, #tpu.memory_space<vmem>>, vector<8x32xf32>,
    %c0_122 = arith.constant 0 : index
    %c0_123 = arith.constant 0 : index
    %225 = vector.load %arg6[%c0_122, %c0_123] : memref<8x32xf32, #tpu.memory_space<vmem>>, vector<8x32xf32>
    tpu.vector_store %arg6[%c0_122, %c0_123], %221 {strides = array<i32>} : memref<8x32xf32, #tpu.memory_space<vmem>>, vector<8x32xf32>,
    %226 = arith.index_cast %c6_i32 : i32 to index
    %c0_124 = arith.constant 0 : index
    %c0_125 = arith.constant 0 : index
    %227 = vector.load %arg4[%226, %c0_124, %c0_125] : memref<8x8x32xf32, #tpu.memory_space<vmem>>, vector<1x8x32xf32>
    %228 = vector.shape_cast %227 : vector<1x8x32xf32> to vector<8x32xf32>
    %229 = vector.shape_cast %223 : vector<8x32xf32> to vector<1x8x32xf32>
    tpu.vector_store %arg4[%226, %c0_124, %c0_125], %229 {strides = array<i32>} : memref<8x8x32xf32, #tpu.memory_space<vmem>>, vector<1x8x32xf32>,
    %c7_i32 = arith.constant 7 : i32
    %c0_126 = arith.constant 0 : index
    %c0_127 = arith.constant 0 : index
    %230 = vector.load %arg5[%c0_126, %c0_127] : memref<8x32xf32, #tpu.memory_space<vmem>>, vector<8x32xf32>
    %c0_128 = arith.constant 0 : index
    %c0_129 = arith.constant 0 : index
    %231 = vector.load %arg6[%c0_128, %c0_129] : memref<8x32xf32, #tpu.memory_space<vmem>>, vector<8x32xf32>
    %232 = arith.index_cast %c7_i32 : i32 to index
    %c0_130 = arith.constant 0 : index
    %c0_131 = arith.constant 0 : index
    %233 = vector.load %arg2[%232, %c0_130, %c0_131] : memref<8x8x128xf32, #tpu.memory_space<vmem>>, vector<1x8x128xf32>
    %234 = vector.shape_cast %233 : vector<1x8x128xf32> to vector<8x128xf32>
    %c0_132 = arith.constant 0 : index
    %c0_133 = arith.constant 0 : index
    %235 = vector.load %arg3[%c0_132, %c0_133] : memref<32x128xf32, #tpu.memory_space<vmem>>, vector<32x128xf32>
    %cst_134 = arith.constant dense<0.000000e+00> : vector<8x128xf32>
    %236 = tpu.matmul %230, %235, %cst_134 {dimension_numbers = #tpu.dot_dimension_numbers<[1], [0], [0], [1], [0, 0, 1, 1], [], []>} : vector<8x32xf32>, vector<32x128xf32>, vector<8x128xf32> -> vector<8x128xf32>
    %237 = arith.addf %234, %236 : vector<8x128xf32>
    %cst_135 = arith.constant 5.000000e-01 : f32
    %238 = vector.broadcast %cst_135 : f32 to vector<8x128xf32>
    %239 = arith.mulf %238, %237 : vector<8x128xf32>
    %240 = arith.select %5, %239, %237 : vector<8x128xi1>, vector<8x128xf32>
    %241 = math.tanh %240 : vector<8x128xf32>
    %cst_136 = arith.constant 5.000000e-01 : f32
    %242 = vector.broadcast %cst_136 : f32 to vector<8x128xf32>
    %243 = arith.mulf %242, %241 : vector<8x128xf32>
    %cst_137 = arith.constant 5.000000e-01 : f32
    %244 = vector.broadcast %cst_137 : f32 to vector<8x128xf32>
    %245 = arith.addf %244, %243 : vector<8x128xf32>
    %246 = arith.select %5, %245, %241 : vector<8x128xi1>, vector<8x128xf32>
    %247 = vector.extract_strided_slice %246 {offsets = [0, 0], sizes = [8, 32], strides = [1, 1]} : vector<8x128xf32> to vector<8x32xf32>
    %248 = vector.extract_strided_slice %246 {offsets = [0, 32], sizes = [8, 32], strides = [1, 1]} : vector<8x128xf32> to vector<8x32xf32>
    %249 = vector.extract_strided_slice %246 {offsets = [0, 64], sizes = [8, 32], strides = [1, 1]} : vector<8x128xf32> to vector<8x32xf32>
    %250 = vector.extract_strided_slice %246 {offsets = [0, 96], sizes = [8, 32], strides = [1, 1]} : vector<8x128xf32> to vector<8x32xf32>
    %251 = arith.mulf %248, %231 : vector<8x32xf32>
    %252 = arith.mulf %247, %250 : vector<8x32xf32>
    %253 = arith.addf %251, %252 : vector<8x32xf32>
    %254 = math.tanh %253 : vector<8x32xf32>
    %255 = arith.mulf %249, %254 : vector<8x32xf32>
    %c0_138 = arith.constant 0 : index
    %c0_139 = arith.constant 0 : index
    %256 = vector.load %arg5[%c0_138, %c0_139] : memref<8x32xf32, #tpu.memory_space<vmem>>, vector<8x32xf32>
    tpu.vector_store %arg5[%c0_138, %c0_139], %255 {strides = array<i32>} : memref<8x32xf32, #tpu.memory_space<vmem>>, vector<8x32xf32>,
    %c0_140 = arith.constant 0 : index
    %c0_141 = arith.constant 0 : index
    %257 = vector.load %arg6[%c0_140, %c0_141] : memref<8x32xf32, #tpu.memory_space<vmem>>, vector<8x32xf32>
    tpu.vector_store %arg6[%c0_140, %c0_141], %253 {strides = array<i32>} : memref<8x32xf32, #tpu.memory_space<vmem>>, vector<8x32xf32>,
    %258 = arith.index_cast %c7_i32 : i32 to index
    %c0_142 = arith.constant 0 : index
    %c0_143 = arith.constant 0 : index
    %259 = vector.load %arg4[%258, %c0_142, %c0_143] : memref<8x8x32xf32, #tpu.memory_space<vmem>>, vector<1x8x32xf32>
    %260 = vector.shape_cast %259 : vector<1x8x32xf32> to vector<8x32xf32>
    %261 = vector.shape_cast %255 : vector<8x32xf32> to vector<1x8x32xf32>
    tpu.vector_store %arg4[%258, %c0_142, %c0_143], %261 {strides = array<i32>} : memref<8x8x32xf32, #tpu.memory_space<vmem>>, vector<1x8x32xf32>,
    %c8_i32 = arith.constant 8 : i32
    return
  }
  func.func @transform_0(%arg0: i32, %arg1: i32) -> (i32, i32, i32) {
    %c0_i32 = arith.constant 0 : i32
    %c0_i32_0 = arith.constant 0 : i32
    return %arg1, %arg0, %c0_i32 : i32, i32, i32
  }
  func.func @transform_1(%arg0: i32, %arg1: i32) -> (i32, i32) {
    %c0_i32 = arith.constant 0 : i32
    %c0_i32_0 = arith.constant 0 : i32
    %c0_i32_1 = arith.constant 0 : i32
    return %c0_i32, %c0_i32_0 : i32, i32
  }
  func.func @transform_2(%arg0: i32, %arg1: i32) -> (i32, i32, i32) {
    %c0_i32 = arith.constant 0 : i32
    %c0_i32_0 = arith.constant 0 : i32
    return %arg1, %arg0, %c0_i32 : i32, i32, i32
  }
}

module attributes {stable_mosaic.version = 11 : i64} {
  func.func @kernel(%arg0: i32, %arg1: i32, %arg2: memref<8x8x128xf32, #tpu.memory_space<vmem>>, %arg3: memref<32x128xf32, #tpu.memory_space<vmem>>, %arg4: memref<32x1xf32, #tpu.memory_space<vmem>>, %arg5: memref<1x1xf32, #tpu.memory_space<vmem>>, %arg6: memref<8x1xf32, #tpu.memory_space<vmem>>, %arg7: memref<8x32xf32, #tpu.memory_space<vmem>>, %arg8: memref<8x32xf32, #tpu.memory_space<vmem>>) attributes {dimension_semantics = [#tpu.dimension_semantics<parallel>, #tpu.dimension_semantics<arbitrary>], iteration_bounds = array<i64: 1, 1>, scalar_prefetch = 0 : i64, scratch_operands = 2 : i64, tpu.core_type = #tpu.core_type<tc>, window_params = [{transform_indices = @transform_0, window_bounds = array<i64: 8, 8, 128>}, {pipeline_mode = #tpu.pipeline_mode<synchronous>, transform_indices = @transform_1, window_bounds = array<i64: 32, 128>}, {pipeline_mode = #tpu.pipeline_mode<synchronous>, transform_indices = @transform_2, window_bounds = array<i64: 32, 1>}, {pipeline_mode = #tpu.pipeline_mode<synchronous>, transform_indices = @transform_3, window_bounds = array<i64: 1, 1>}, {transform_indices = @transform_4, window_bounds = array<i64: 8, 1>}]} {
    %c0_i32 = arith.constant 0 : i32
    %0 = arith.cmpi eq, %arg1, %c0_i32 : i32
    %1 = arith.extui %0 : i1 to i32
    %c0_i32_0 = arith.constant 0 : i32
    %2 = arith.cmpi ne, %1, %c0_i32_0 : i32
    scf.if %2 {
      %cst_130 = arith.constant 0.000000e+00 : f32
      %233 = vector.broadcast %cst_130 : f32 to vector<8x32xf32>
      %c0_131 = arith.constant 0 : index
      %c0_132 = arith.constant 0 : index
      %234 = vector.load %arg7[%c0_131, %c0_132] : memref<8x32xf32, #tpu.memory_space<vmem>>, vector<8x32xf32>
      tpu.vector_store %arg7[%c0_131, %c0_132], %233 {strides = array<i32>} : memref<8x32xf32, #tpu.memory_space<vmem>>, vector<8x32xf32>,
      %cst_133 = arith.constant 0.000000e+00 : f32
      %235 = vector.broadcast %cst_133 : f32 to vector<8x32xf32>
      %c0_134 = arith.constant 0 : index
      %c0_135 = arith.constant 0 : index
      %236 = vector.load %arg8[%c0_134, %c0_135] : memref<8x32xf32, #tpu.memory_space<vmem>>, vector<8x32xf32>
      tpu.vector_store %arg8[%c0_134, %c0_135], %235 {strides = array<i32>} : memref<8x32xf32, #tpu.memory_space<vmem>>, vector<8x32xf32>,
    } else {
    }
    %3 = tpu.iota {dimensions = array<i32: 1>} : vector<8x128xi32>
    %c96_i32 = arith.constant 96 : i32
    %4 = vector.broadcast %c96_i32 : i32 to vector<8x128xi32>
    %5 = arith.cmpi slt, %3, %4 : vector<8x128xi32>
    %c0_i32_1 = arith.constant 0 : i32
    %c0 = arith.constant 0 : index
    %c0_2 = arith.constant 0 : index
    %6 = vector.load %arg7[%c0, %c0_2] : memref<8x32xf32, #tpu.memory_space<vmem>>, vector<8x32xf32>
    %c0_3 = arith.constant 0 : index
    %c0_4 = arith.constant 0 : index
    %7 = vector.load %arg8[%c0_3, %c0_4] : memref<8x32xf32, #tpu.memory_space<vmem>>, vector<8x32xf32>
    %8 = arith.index_cast %c0_i32_1 : i32 to index
    %c0_5 = arith.constant 0 : index
    %c0_6 = arith.constant 0 : index
    %9 = vector.load %arg2[%8, %c0_5, %c0_6] : memref<8x8x128xf32, #tpu.memory_space<vmem>>, vector<1x8x128xf32>
    %10 = vector.shape_cast %9 : vector<1x8x128xf32> to vector<8x128xf32>
    %c0_7 = arith.constant 0 : index
    %c0_8 = arith.constant 0 : index
    %11 = vector.load %arg3[%c0_7, %c0_8] : memref<32x128xf32, #tpu.memory_space<vmem>>, vector<32x128xf32>
    %cst = arith.constant dense<0.000000e+00> : vector<8x128xf32>
    %12 = tpu.matmul %6, %11, %cst {dimension_numbers = #tpu.dot_dimension_numbers<[1], [0], [0], [1], [0, 0, 1, 1], [], []>} : vector<8x32xf32>, vector<32x128xf32>, vector<8x128xf32> -> vector<8x128xf32>
    %13 = arith.addf %10, %12 : vector<8x128xf32>
    %cst_9 = arith.constant 5.000000e-01 : f32
    %14 = vector.broadcast %cst_9 : f32 to vector<8x128xf32>
    %15 = arith.mulf %14, %13 : vector<8x128xf32>
    %16 = arith.select %5, %15, %13 : vector<8x128xi1>, vector<8x128xf32>
    %17 = math.tanh %16 : vector<8x128xf32>
    %cst_10 = arith.constant 5.000000e-01 : f32
    %18 = vector.broadcast %cst_10 : f32 to vector<8x128xf32>
    %19 = arith.mulf %18, %17 : vector<8x128xf32>
    %cst_11 = arith.constant 5.000000e-01 : f32
    %20 = vector.broadcast %cst_11 : f32 to vector<8x128xf32>
    %21 = arith.addf %20, %19 : vector<8x128xf32>
    %22 = arith.select %5, %21, %17 : vector<8x128xi1>, vector<8x128xf32>
    %23 = vector.extract_strided_slice %22 {offsets = [0, 0], sizes = [8, 32], strides = [1, 1]} : vector<8x128xf32> to vector<8x32xf32>
    %24 = vector.extract_strided_slice %22 {offsets = [0, 32], sizes = [8, 32], strides = [1, 1]} : vector<8x128xf32> to vector<8x32xf32>
    %25 = vector.extract_strided_slice %22 {offsets = [0, 64], sizes = [8, 32], strides = [1, 1]} : vector<8x128xf32> to vector<8x32xf32>
    %26 = vector.extract_strided_slice %22 {offsets = [0, 96], sizes = [8, 32], strides = [1, 1]} : vector<8x128xf32> to vector<8x32xf32>
    %27 = arith.mulf %24, %7 : vector<8x32xf32>
    %28 = arith.mulf %23, %26 : vector<8x32xf32>
    %29 = arith.addf %27, %28 : vector<8x32xf32>
    %30 = math.tanh %29 : vector<8x32xf32>
    %31 = arith.mulf %25, %30 : vector<8x32xf32>
    %c0_12 = arith.constant 0 : index
    %c0_13 = arith.constant 0 : index
    %32 = vector.load %arg7[%c0_12, %c0_13] : memref<8x32xf32, #tpu.memory_space<vmem>>, vector<8x32xf32>
    tpu.vector_store %arg7[%c0_12, %c0_13], %31 {strides = array<i32>} : memref<8x32xf32, #tpu.memory_space<vmem>>, vector<8x32xf32>,
    %c0_14 = arith.constant 0 : index
    %c0_15 = arith.constant 0 : index
    %33 = vector.load %arg8[%c0_14, %c0_15] : memref<8x32xf32, #tpu.memory_space<vmem>>, vector<8x32xf32>
    tpu.vector_store %arg8[%c0_14, %c0_15], %29 {strides = array<i32>} : memref<8x32xf32, #tpu.memory_space<vmem>>, vector<8x32xf32>,
    %c1_i32 = arith.constant 1 : i32
    %c0_16 = arith.constant 0 : index
    %c0_17 = arith.constant 0 : index
    %34 = vector.load %arg7[%c0_16, %c0_17] : memref<8x32xf32, #tpu.memory_space<vmem>>, vector<8x32xf32>
    %c0_18 = arith.constant 0 : index
    %c0_19 = arith.constant 0 : index
    %35 = vector.load %arg8[%c0_18, %c0_19] : memref<8x32xf32, #tpu.memory_space<vmem>>, vector<8x32xf32>
    %36 = arith.index_cast %c1_i32 : i32 to index
    %c0_20 = arith.constant 0 : index
    %c0_21 = arith.constant 0 : index
    %37 = vector.load %arg2[%36, %c0_20, %c0_21] : memref<8x8x128xf32, #tpu.memory_space<vmem>>, vector<1x8x128xf32>
    %38 = vector.shape_cast %37 : vector<1x8x128xf32> to vector<8x128xf32>
    %c0_22 = arith.constant 0 : index
    %c0_23 = arith.constant 0 : index
    %39 = vector.load %arg3[%c0_22, %c0_23] : memref<32x128xf32, #tpu.memory_space<vmem>>, vector<32x128xf32>
    %cst_24 = arith.constant dense<0.000000e+00> : vector<8x128xf32>
    %40 = tpu.matmul %34, %39, %cst_24 {dimension_numbers = #tpu.dot_dimension_numbers<[1], [0], [0], [1], [0, 0, 1, 1], [], []>} : vector<8x32xf32>, vector<32x128xf32>, vector<8x128xf32> -> vector<8x128xf32>
    %41 = arith.addf %38, %40 : vector<8x128xf32>
    %cst_25 = arith.constant 5.000000e-01 : f32
    %42 = vector.broadcast %cst_25 : f32 to vector<8x128xf32>
    %43 = arith.mulf %42, %41 : vector<8x128xf32>
    %44 = arith.select %5, %43, %41 : vector<8x128xi1>, vector<8x128xf32>
    %45 = math.tanh %44 : vector<8x128xf32>
    %cst_26 = arith.constant 5.000000e-01 : f32
    %46 = vector.broadcast %cst_26 : f32 to vector<8x128xf32>
    %47 = arith.mulf %46, %45 : vector<8x128xf32>
    %cst_27 = arith.constant 5.000000e-01 : f32
    %48 = vector.broadcast %cst_27 : f32 to vector<8x128xf32>
    %49 = arith.addf %48, %47 : vector<8x128xf32>
    %50 = arith.select %5, %49, %45 : vector<8x128xi1>, vector<8x128xf32>
    %51 = vector.extract_strided_slice %50 {offsets = [0, 0], sizes = [8, 32], strides = [1, 1]} : vector<8x128xf32> to vector<8x32xf32>
    %52 = vector.extract_strided_slice %50 {offsets = [0, 32], sizes = [8, 32], strides = [1, 1]} : vector<8x128xf32> to vector<8x32xf32>
    %53 = vector.extract_strided_slice %50 {offsets = [0, 64], sizes = [8, 32], strides = [1, 1]} : vector<8x128xf32> to vector<8x32xf32>
    %54 = vector.extract_strided_slice %50 {offsets = [0, 96], sizes = [8, 32], strides = [1, 1]} : vector<8x128xf32> to vector<8x32xf32>
    %55 = arith.mulf %52, %35 : vector<8x32xf32>
    %56 = arith.mulf %51, %54 : vector<8x32xf32>
    %57 = arith.addf %55, %56 : vector<8x32xf32>
    %58 = math.tanh %57 : vector<8x32xf32>
    %59 = arith.mulf %53, %58 : vector<8x32xf32>
    %c0_28 = arith.constant 0 : index
    %c0_29 = arith.constant 0 : index
    %60 = vector.load %arg7[%c0_28, %c0_29] : memref<8x32xf32, #tpu.memory_space<vmem>>, vector<8x32xf32>
    tpu.vector_store %arg7[%c0_28, %c0_29], %59 {strides = array<i32>} : memref<8x32xf32, #tpu.memory_space<vmem>>, vector<8x32xf32>,
    %c0_30 = arith.constant 0 : index
    %c0_31 = arith.constant 0 : index
    %61 = vector.load %arg8[%c0_30, %c0_31] : memref<8x32xf32, #tpu.memory_space<vmem>>, vector<8x32xf32>
    tpu.vector_store %arg8[%c0_30, %c0_31], %57 {strides = array<i32>} : memref<8x32xf32, #tpu.memory_space<vmem>>, vector<8x32xf32>,
    %c2_i32 = arith.constant 2 : i32
    %c0_32 = arith.constant 0 : index
    %c0_33 = arith.constant 0 : index
    %62 = vector.load %arg7[%c0_32, %c0_33] : memref<8x32xf32, #tpu.memory_space<vmem>>, vector<8x32xf32>
    %c0_34 = arith.constant 0 : index
    %c0_35 = arith.constant 0 : index
    %63 = vector.load %arg8[%c0_34, %c0_35] : memref<8x32xf32, #tpu.memory_space<vmem>>, vector<8x32xf32>
    %64 = arith.index_cast %c2_i32 : i32 to index
    %c0_36 = arith.constant 0 : index
    %c0_37 = arith.constant 0 : index
    %65 = vector.load %arg2[%64, %c0_36, %c0_37] : memref<8x8x128xf32, #tpu.memory_space<vmem>>, vector<1x8x128xf32>
    %66 = vector.shape_cast %65 : vector<1x8x128xf32> to vector<8x128xf32>
    %c0_38 = arith.constant 0 : index
    %c0_39 = arith.constant 0 : index
    %67 = vector.load %arg3[%c0_38, %c0_39] : memref<32x128xf32, #tpu.memory_space<vmem>>, vector<32x128xf32>
    %cst_40 = arith.constant dense<0.000000e+00> : vector<8x128xf32>
    %68 = tpu.matmul %62, %67, %cst_40 {dimension_numbers = #tpu.dot_dimension_numbers<[1], [0], [0], [1], [0, 0, 1, 1], [], []>} : vector<8x32xf32>, vector<32x128xf32>, vector<8x128xf32> -> vector<8x128xf32>
    %69 = arith.addf %66, %68 : vector<8x128xf32>
    %cst_41 = arith.constant 5.000000e-01 : f32
    %70 = vector.broadcast %cst_41 : f32 to vector<8x128xf32>
    %71 = arith.mulf %70, %69 : vector<8x128xf32>
    %72 = arith.select %5, %71, %69 : vector<8x128xi1>, vector<8x128xf32>
    %73 = math.tanh %72 : vector<8x128xf32>
    %cst_42 = arith.constant 5.000000e-01 : f32
    %74 = vector.broadcast %cst_42 : f32 to vector<8x128xf32>
    %75 = arith.mulf %74, %73 : vector<8x128xf32>
    %cst_43 = arith.constant 5.000000e-01 : f32
    %76 = vector.broadcast %cst_43 : f32 to vector<8x128xf32>
    %77 = arith.addf %76, %75 : vector<8x128xf32>
    %78 = arith.select %5, %77, %73 : vector<8x128xi1>, vector<8x128xf32>
    %79 = vector.extract_strided_slice %78 {offsets = [0, 0], sizes = [8, 32], strides = [1, 1]} : vector<8x128xf32> to vector<8x32xf32>
    %80 = vector.extract_strided_slice %78 {offsets = [0, 32], sizes = [8, 32], strides = [1, 1]} : vector<8x128xf32> to vector<8x32xf32>
    %81 = vector.extract_strided_slice %78 {offsets = [0, 64], sizes = [8, 32], strides = [1, 1]} : vector<8x128xf32> to vector<8x32xf32>
    %82 = vector.extract_strided_slice %78 {offsets = [0, 96], sizes = [8, 32], strides = [1, 1]} : vector<8x128xf32> to vector<8x32xf32>
    %83 = arith.mulf %80, %63 : vector<8x32xf32>
    %84 = arith.mulf %79, %82 : vector<8x32xf32>
    %85 = arith.addf %83, %84 : vector<8x32xf32>
    %86 = math.tanh %85 : vector<8x32xf32>
    %87 = arith.mulf %81, %86 : vector<8x32xf32>
    %c0_44 = arith.constant 0 : index
    %c0_45 = arith.constant 0 : index
    %88 = vector.load %arg7[%c0_44, %c0_45] : memref<8x32xf32, #tpu.memory_space<vmem>>, vector<8x32xf32>
    tpu.vector_store %arg7[%c0_44, %c0_45], %87 {strides = array<i32>} : memref<8x32xf32, #tpu.memory_space<vmem>>, vector<8x32xf32>,
    %c0_46 = arith.constant 0 : index
    %c0_47 = arith.constant 0 : index
    %89 = vector.load %arg8[%c0_46, %c0_47] : memref<8x32xf32, #tpu.memory_space<vmem>>, vector<8x32xf32>
    tpu.vector_store %arg8[%c0_46, %c0_47], %85 {strides = array<i32>} : memref<8x32xf32, #tpu.memory_space<vmem>>, vector<8x32xf32>,
    %c3_i32 = arith.constant 3 : i32
    %c0_48 = arith.constant 0 : index
    %c0_49 = arith.constant 0 : index
    %90 = vector.load %arg7[%c0_48, %c0_49] : memref<8x32xf32, #tpu.memory_space<vmem>>, vector<8x32xf32>
    %c0_50 = arith.constant 0 : index
    %c0_51 = arith.constant 0 : index
    %91 = vector.load %arg8[%c0_50, %c0_51] : memref<8x32xf32, #tpu.memory_space<vmem>>, vector<8x32xf32>
    %92 = arith.index_cast %c3_i32 : i32 to index
    %c0_52 = arith.constant 0 : index
    %c0_53 = arith.constant 0 : index
    %93 = vector.load %arg2[%92, %c0_52, %c0_53] : memref<8x8x128xf32, #tpu.memory_space<vmem>>, vector<1x8x128xf32>
    %94 = vector.shape_cast %93 : vector<1x8x128xf32> to vector<8x128xf32>
    %c0_54 = arith.constant 0 : index
    %c0_55 = arith.constant 0 : index
    %95 = vector.load %arg3[%c0_54, %c0_55] : memref<32x128xf32, #tpu.memory_space<vmem>>, vector<32x128xf32>
    %cst_56 = arith.constant dense<0.000000e+00> : vector<8x128xf32>
    %96 = tpu.matmul %90, %95, %cst_56 {dimension_numbers = #tpu.dot_dimension_numbers<[1], [0], [0], [1], [0, 0, 1, 1], [], []>} : vector<8x32xf32>, vector<32x128xf32>, vector<8x128xf32> -> vector<8x128xf32>
    %97 = arith.addf %94, %96 : vector<8x128xf32>
    %cst_57 = arith.constant 5.000000e-01 : f32
    %98 = vector.broadcast %cst_57 : f32 to vector<8x128xf32>
    %99 = arith.mulf %98, %97 : vector<8x128xf32>
    %100 = arith.select %5, %99, %97 : vector<8x128xi1>, vector<8x128xf32>
    %101 = math.tanh %100 : vector<8x128xf32>
    %cst_58 = arith.constant 5.000000e-01 : f32
    %102 = vector.broadcast %cst_58 : f32 to vector<8x128xf32>
    %103 = arith.mulf %102, %101 : vector<8x128xf32>
    %cst_59 = arith.constant 5.000000e-01 : f32
    %104 = vector.broadcast %cst_59 : f32 to vector<8x128xf32>
    %105 = arith.addf %104, %103 : vector<8x128xf32>
    %106 = arith.select %5, %105, %101 : vector<8x128xi1>, vector<8x128xf32>
    %107 = vector.extract_strided_slice %106 {offsets = [0, 0], sizes = [8, 32], strides = [1, 1]} : vector<8x128xf32> to vector<8x32xf32>
    %108 = vector.extract_strided_slice %106 {offsets = [0, 32], sizes = [8, 32], strides = [1, 1]} : vector<8x128xf32> to vector<8x32xf32>
    %109 = vector.extract_strided_slice %106 {offsets = [0, 64], sizes = [8, 32], strides = [1, 1]} : vector<8x128xf32> to vector<8x32xf32>
    %110 = vector.extract_strided_slice %106 {offsets = [0, 96], sizes = [8, 32], strides = [1, 1]} : vector<8x128xf32> to vector<8x32xf32>
    %111 = arith.mulf %108, %91 : vector<8x32xf32>
    %112 = arith.mulf %107, %110 : vector<8x32xf32>
    %113 = arith.addf %111, %112 : vector<8x32xf32>
    %114 = math.tanh %113 : vector<8x32xf32>
    %115 = arith.mulf %109, %114 : vector<8x32xf32>
    %c0_60 = arith.constant 0 : index
    %c0_61 = arith.constant 0 : index
    %116 = vector.load %arg7[%c0_60, %c0_61] : memref<8x32xf32, #tpu.memory_space<vmem>>, vector<8x32xf32>
    tpu.vector_store %arg7[%c0_60, %c0_61], %115 {strides = array<i32>} : memref<8x32xf32, #tpu.memory_space<vmem>>, vector<8x32xf32>,
    %c0_62 = arith.constant 0 : index
    %c0_63 = arith.constant 0 : index
    %117 = vector.load %arg8[%c0_62, %c0_63] : memref<8x32xf32, #tpu.memory_space<vmem>>, vector<8x32xf32>
    tpu.vector_store %arg8[%c0_62, %c0_63], %113 {strides = array<i32>} : memref<8x32xf32, #tpu.memory_space<vmem>>, vector<8x32xf32>,
    %c4_i32 = arith.constant 4 : i32
    %c0_64 = arith.constant 0 : index
    %c0_65 = arith.constant 0 : index
    %118 = vector.load %arg7[%c0_64, %c0_65] : memref<8x32xf32, #tpu.memory_space<vmem>>, vector<8x32xf32>
    %c0_66 = arith.constant 0 : index
    %c0_67 = arith.constant 0 : index
    %119 = vector.load %arg8[%c0_66, %c0_67] : memref<8x32xf32, #tpu.memory_space<vmem>>, vector<8x32xf32>
    %120 = arith.index_cast %c4_i32 : i32 to index
    %c0_68 = arith.constant 0 : index
    %c0_69 = arith.constant 0 : index
    %121 = vector.load %arg2[%120, %c0_68, %c0_69] : memref<8x8x128xf32, #tpu.memory_space<vmem>>, vector<1x8x128xf32>
    %122 = vector.shape_cast %121 : vector<1x8x128xf32> to vector<8x128xf32>
    %c0_70 = arith.constant 0 : index
    %c0_71 = arith.constant 0 : index
    %123 = vector.load %arg3[%c0_70, %c0_71] : memref<32x128xf32, #tpu.memory_space<vmem>>, vector<32x128xf32>
    %cst_72 = arith.constant dense<0.000000e+00> : vector<8x128xf32>
    %124 = tpu.matmul %118, %123, %cst_72 {dimension_numbers = #tpu.dot_dimension_numbers<[1], [0], [0], [1], [0, 0, 1, 1], [], []>} : vector<8x32xf32>, vector<32x128xf32>, vector<8x128xf32> -> vector<8x128xf32>
    %125 = arith.addf %122, %124 : vector<8x128xf32>
    %cst_73 = arith.constant 5.000000e-01 : f32
    %126 = vector.broadcast %cst_73 : f32 to vector<8x128xf32>
    %127 = arith.mulf %126, %125 : vector<8x128xf32>
    %128 = arith.select %5, %127, %125 : vector<8x128xi1>, vector<8x128xf32>
    %129 = math.tanh %128 : vector<8x128xf32>
    %cst_74 = arith.constant 5.000000e-01 : f32
    %130 = vector.broadcast %cst_74 : f32 to vector<8x128xf32>
    %131 = arith.mulf %130, %129 : vector<8x128xf32>
    %cst_75 = arith.constant 5.000000e-01 : f32
    %132 = vector.broadcast %cst_75 : f32 to vector<8x128xf32>
    %133 = arith.addf %132, %131 : vector<8x128xf32>
    %134 = arith.select %5, %133, %129 : vector<8x128xi1>, vector<8x128xf32>
    %135 = vector.extract_strided_slice %134 {offsets = [0, 0], sizes = [8, 32], strides = [1, 1]} : vector<8x128xf32> to vector<8x32xf32>
    %136 = vector.extract_strided_slice %134 {offsets = [0, 32], sizes = [8, 32], strides = [1, 1]} : vector<8x128xf32> to vector<8x32xf32>
    %137 = vector.extract_strided_slice %134 {offsets = [0, 64], sizes = [8, 32], strides = [1, 1]} : vector<8x128xf32> to vector<8x32xf32>
    %138 = vector.extract_strided_slice %134 {offsets = [0, 96], sizes = [8, 32], strides = [1, 1]} : vector<8x128xf32> to vector<8x32xf32>
    %139 = arith.mulf %136, %119 : vector<8x32xf32>
    %140 = arith.mulf %135, %138 : vector<8x32xf32>
    %141 = arith.addf %139, %140 : vector<8x32xf32>
    %142 = math.tanh %141 : vector<8x32xf32>
    %143 = arith.mulf %137, %142 : vector<8x32xf32>
    %c0_76 = arith.constant 0 : index
    %c0_77 = arith.constant 0 : index
    %144 = vector.load %arg7[%c0_76, %c0_77] : memref<8x32xf32, #tpu.memory_space<vmem>>, vector<8x32xf32>
    tpu.vector_store %arg7[%c0_76, %c0_77], %143 {strides = array<i32>} : memref<8x32xf32, #tpu.memory_space<vmem>>, vector<8x32xf32>,
    %c0_78 = arith.constant 0 : index
    %c0_79 = arith.constant 0 : index
    %145 = vector.load %arg8[%c0_78, %c0_79] : memref<8x32xf32, #tpu.memory_space<vmem>>, vector<8x32xf32>
    tpu.vector_store %arg8[%c0_78, %c0_79], %141 {strides = array<i32>} : memref<8x32xf32, #tpu.memory_space<vmem>>, vector<8x32xf32>,
    %c5_i32 = arith.constant 5 : i32
    %c0_80 = arith.constant 0 : index
    %c0_81 = arith.constant 0 : index
    %146 = vector.load %arg7[%c0_80, %c0_81] : memref<8x32xf32, #tpu.memory_space<vmem>>, vector<8x32xf32>
    %c0_82 = arith.constant 0 : index
    %c0_83 = arith.constant 0 : index
    %147 = vector.load %arg8[%c0_82, %c0_83] : memref<8x32xf32, #tpu.memory_space<vmem>>, vector<8x32xf32>
    %148 = arith.index_cast %c5_i32 : i32 to index
    %c0_84 = arith.constant 0 : index
    %c0_85 = arith.constant 0 : index
    %149 = vector.load %arg2[%148, %c0_84, %c0_85] : memref<8x8x128xf32, #tpu.memory_space<vmem>>, vector<1x8x128xf32>
    %150 = vector.shape_cast %149 : vector<1x8x128xf32> to vector<8x128xf32>
    %c0_86 = arith.constant 0 : index
    %c0_87 = arith.constant 0 : index
    %151 = vector.load %arg3[%c0_86, %c0_87] : memref<32x128xf32, #tpu.memory_space<vmem>>, vector<32x128xf32>
    %cst_88 = arith.constant dense<0.000000e+00> : vector<8x128xf32>
    %152 = tpu.matmul %146, %151, %cst_88 {dimension_numbers = #tpu.dot_dimension_numbers<[1], [0], [0], [1], [0, 0, 1, 1], [], []>} : vector<8x32xf32>, vector<32x128xf32>, vector<8x128xf32> -> vector<8x128xf32>
    %153 = arith.addf %150, %152 : vector<8x128xf32>
    %cst_89 = arith.constant 5.000000e-01 : f32
    %154 = vector.broadcast %cst_89 : f32 to vector<8x128xf32>
    %155 = arith.mulf %154, %153 : vector<8x128xf32>
    %156 = arith.select %5, %155, %153 : vector<8x128xi1>, vector<8x128xf32>
    %157 = math.tanh %156 : vector<8x128xf32>
    %cst_90 = arith.constant 5.000000e-01 : f32
    %158 = vector.broadcast %cst_90 : f32 to vector<8x128xf32>
    %159 = arith.mulf %158, %157 : vector<8x128xf32>
    %cst_91 = arith.constant 5.000000e-01 : f32
    %160 = vector.broadcast %cst_91 : f32 to vector<8x128xf32>
    %161 = arith.addf %160, %159 : vector<8x128xf32>
    %162 = arith.select %5, %161, %157 : vector<8x128xi1>, vector<8x128xf32>
    %163 = vector.extract_strided_slice %162 {offsets = [0, 0], sizes = [8, 32], strides = [1, 1]} : vector<8x128xf32> to vector<8x32xf32>
    %164 = vector.extract_strided_slice %162 {offsets = [0, 32], sizes = [8, 32], strides = [1, 1]} : vector<8x128xf32> to vector<8x32xf32>
    %165 = vector.extract_strided_slice %162 {offsets = [0, 64], sizes = [8, 32], strides = [1, 1]} : vector<8x128xf32> to vector<8x32xf32>
    %166 = vector.extract_strided_slice %162 {offsets = [0, 96], sizes = [8, 32], strides = [1, 1]} : vector<8x128xf32> to vector<8x32xf32>
    %167 = arith.mulf %164, %147 : vector<8x32xf32>
    %168 = arith.mulf %163, %166 : vector<8x32xf32>
    %169 = arith.addf %167, %168 : vector<8x32xf32>
    %170 = math.tanh %169 : vector<8x32xf32>
    %171 = arith.mulf %165, %170 : vector<8x32xf32>
    %c0_92 = arith.constant 0 : index
    %c0_93 = arith.constant 0 : index
    %172 = vector.load %arg7[%c0_92, %c0_93] : memref<8x32xf32, #tpu.memory_space<vmem>>, vector<8x32xf32>
    tpu.vector_store %arg7[%c0_92, %c0_93], %171 {strides = array<i32>} : memref<8x32xf32, #tpu.memory_space<vmem>>, vector<8x32xf32>,
    %c0_94 = arith.constant 0 : index
    %c0_95 = arith.constant 0 : index
    %173 = vector.load %arg8[%c0_94, %c0_95] : memref<8x32xf32, #tpu.memory_space<vmem>>, vector<8x32xf32>
    tpu.vector_store %arg8[%c0_94, %c0_95], %169 {strides = array<i32>} : memref<8x32xf32, #tpu.memory_space<vmem>>, vector<8x32xf32>,
    %c6_i32 = arith.constant 6 : i32
    %c0_96 = arith.constant 0 : index
    %c0_97 = arith.constant 0 : index
    %174 = vector.load %arg7[%c0_96, %c0_97] : memref<8x32xf32, #tpu.memory_space<vmem>>, vector<8x32xf32>
    %c0_98 = arith.constant 0 : index
    %c0_99 = arith.constant 0 : index
    %175 = vector.load %arg8[%c0_98, %c0_99] : memref<8x32xf32, #tpu.memory_space<vmem>>, vector<8x32xf32>
    %176 = arith.index_cast %c6_i32 : i32 to index
    %c0_100 = arith.constant 0 : index
    %c0_101 = arith.constant 0 : index
    %177 = vector.load %arg2[%176, %c0_100, %c0_101] : memref<8x8x128xf32, #tpu.memory_space<vmem>>, vector<1x8x128xf32>
    %178 = vector.shape_cast %177 : vector<1x8x128xf32> to vector<8x128xf32>
    %c0_102 = arith.constant 0 : index
    %c0_103 = arith.constant 0 : index
    %179 = vector.load %arg3[%c0_102, %c0_103] : memref<32x128xf32, #tpu.memory_space<vmem>>, vector<32x128xf32>
    %cst_104 = arith.constant dense<0.000000e+00> : vector<8x128xf32>
    %180 = tpu.matmul %174, %179, %cst_104 {dimension_numbers = #tpu.dot_dimension_numbers<[1], [0], [0], [1], [0, 0, 1, 1], [], []>} : vector<8x32xf32>, vector<32x128xf32>, vector<8x128xf32> -> vector<8x128xf32>
    %181 = arith.addf %178, %180 : vector<8x128xf32>
    %cst_105 = arith.constant 5.000000e-01 : f32
    %182 = vector.broadcast %cst_105 : f32 to vector<8x128xf32>
    %183 = arith.mulf %182, %181 : vector<8x128xf32>
    %184 = arith.select %5, %183, %181 : vector<8x128xi1>, vector<8x128xf32>
    %185 = math.tanh %184 : vector<8x128xf32>
    %cst_106 = arith.constant 5.000000e-01 : f32
    %186 = vector.broadcast %cst_106 : f32 to vector<8x128xf32>
    %187 = arith.mulf %186, %185 : vector<8x128xf32>
    %cst_107 = arith.constant 5.000000e-01 : f32
    %188 = vector.broadcast %cst_107 : f32 to vector<8x128xf32>
    %189 = arith.addf %188, %187 : vector<8x128xf32>
    %190 = arith.select %5, %189, %185 : vector<8x128xi1>, vector<8x128xf32>
    %191 = vector.extract_strided_slice %190 {offsets = [0, 0], sizes = [8, 32], strides = [1, 1]} : vector<8x128xf32> to vector<8x32xf32>
    %192 = vector.extract_strided_slice %190 {offsets = [0, 32], sizes = [8, 32], strides = [1, 1]} : vector<8x128xf32> to vector<8x32xf32>
    %193 = vector.extract_strided_slice %190 {offsets = [0, 64], sizes = [8, 32], strides = [1, 1]} : vector<8x128xf32> to vector<8x32xf32>
    %194 = vector.extract_strided_slice %190 {offsets = [0, 96], sizes = [8, 32], strides = [1, 1]} : vector<8x128xf32> to vector<8x32xf32>
    %195 = arith.mulf %192, %175 : vector<8x32xf32>
    %196 = arith.mulf %191, %194 : vector<8x32xf32>
    %197 = arith.addf %195, %196 : vector<8x32xf32>
    %198 = math.tanh %197 : vector<8x32xf32>
    %199 = arith.mulf %193, %198 : vector<8x32xf32>
    %c0_108 = arith.constant 0 : index
    %c0_109 = arith.constant 0 : index
    %200 = vector.load %arg7[%c0_108, %c0_109] : memref<8x32xf32, #tpu.memory_space<vmem>>, vector<8x32xf32>
    tpu.vector_store %arg7[%c0_108, %c0_109], %199 {strides = array<i32>} : memref<8x32xf32, #tpu.memory_space<vmem>>, vector<8x32xf32>,
    %c0_110 = arith.constant 0 : index
    %c0_111 = arith.constant 0 : index
    %201 = vector.load %arg8[%c0_110, %c0_111] : memref<8x32xf32, #tpu.memory_space<vmem>>, vector<8x32xf32>
    tpu.vector_store %arg8[%c0_110, %c0_111], %197 {strides = array<i32>} : memref<8x32xf32, #tpu.memory_space<vmem>>, vector<8x32xf32>,
    %c7_i32 = arith.constant 7 : i32
    %c0_112 = arith.constant 0 : index
    %c0_113 = arith.constant 0 : index
    %202 = vector.load %arg7[%c0_112, %c0_113] : memref<8x32xf32, #tpu.memory_space<vmem>>, vector<8x32xf32>
    %c0_114 = arith.constant 0 : index
    %c0_115 = arith.constant 0 : index
    %203 = vector.load %arg8[%c0_114, %c0_115] : memref<8x32xf32, #tpu.memory_space<vmem>>, vector<8x32xf32>
    %204 = arith.index_cast %c7_i32 : i32 to index
    %c0_116 = arith.constant 0 : index
    %c0_117 = arith.constant 0 : index
    %205 = vector.load %arg2[%204, %c0_116, %c0_117] : memref<8x8x128xf32, #tpu.memory_space<vmem>>, vector<1x8x128xf32>
    %206 = vector.shape_cast %205 : vector<1x8x128xf32> to vector<8x128xf32>
    %c0_118 = arith.constant 0 : index
    %c0_119 = arith.constant 0 : index
    %207 = vector.load %arg3[%c0_118, %c0_119] : memref<32x128xf32, #tpu.memory_space<vmem>>, vector<32x128xf32>
    %cst_120 = arith.constant dense<0.000000e+00> : vector<8x128xf32>
    %208 = tpu.matmul %202, %207, %cst_120 {dimension_numbers = #tpu.dot_dimension_numbers<[1], [0], [0], [1], [0, 0, 1, 1], [], []>} : vector<8x32xf32>, vector<32x128xf32>, vector<8x128xf32> -> vector<8x128xf32>
    %209 = arith.addf %206, %208 : vector<8x128xf32>
    %cst_121 = arith.constant 5.000000e-01 : f32
    %210 = vector.broadcast %cst_121 : f32 to vector<8x128xf32>
    %211 = arith.mulf %210, %209 : vector<8x128xf32>
    %212 = arith.select %5, %211, %209 : vector<8x128xi1>, vector<8x128xf32>
    %213 = math.tanh %212 : vector<8x128xf32>
    %cst_122 = arith.constant 5.000000e-01 : f32
    %214 = vector.broadcast %cst_122 : f32 to vector<8x128xf32>
    %215 = arith.mulf %214, %213 : vector<8x128xf32>
    %cst_123 = arith.constant 5.000000e-01 : f32
    %216 = vector.broadcast %cst_123 : f32 to vector<8x128xf32>
    %217 = arith.addf %216, %215 : vector<8x128xf32>
    %218 = arith.select %5, %217, %213 : vector<8x128xi1>, vector<8x128xf32>
    %219 = vector.extract_strided_slice %218 {offsets = [0, 0], sizes = [8, 32], strides = [1, 1]} : vector<8x128xf32> to vector<8x32xf32>
    %220 = vector.extract_strided_slice %218 {offsets = [0, 32], sizes = [8, 32], strides = [1, 1]} : vector<8x128xf32> to vector<8x32xf32>
    %221 = vector.extract_strided_slice %218 {offsets = [0, 64], sizes = [8, 32], strides = [1, 1]} : vector<8x128xf32> to vector<8x32xf32>
    %222 = vector.extract_strided_slice %218 {offsets = [0, 96], sizes = [8, 32], strides = [1, 1]} : vector<8x128xf32> to vector<8x32xf32>
    %223 = arith.mulf %220, %203 : vector<8x32xf32>
    %224 = arith.mulf %219, %222 : vector<8x32xf32>
    %225 = arith.addf %223, %224 : vector<8x32xf32>
    %226 = math.tanh %225 : vector<8x32xf32>
    %227 = arith.mulf %221, %226 : vector<8x32xf32>
    %c0_124 = arith.constant 0 : index
    %c0_125 = arith.constant 0 : index
    %228 = vector.load %arg7[%c0_124, %c0_125] : memref<8x32xf32, #tpu.memory_space<vmem>>, vector<8x32xf32>
    tpu.vector_store %arg7[%c0_124, %c0_125], %227 {strides = array<i32>} : memref<8x32xf32, #tpu.memory_space<vmem>>, vector<8x32xf32>,
    %c0_126 = arith.constant 0 : index
    %c0_127 = arith.constant 0 : index
    %229 = vector.load %arg8[%c0_126, %c0_127] : memref<8x32xf32, #tpu.memory_space<vmem>>, vector<8x32xf32>
    tpu.vector_store %arg8[%c0_126, %c0_127], %225 {strides = array<i32>} : memref<8x32xf32, #tpu.memory_space<vmem>>, vector<8x32xf32>,
    %c8_i32 = arith.constant 8 : i32
    %c0_i32_128 = arith.constant 0 : i32
    %230 = arith.cmpi eq, %arg1, %c0_i32_128 : i32
    %231 = arith.extui %230 : i1 to i32
    %c0_i32_129 = arith.constant 0 : i32
    %232 = arith.cmpi ne, %231, %c0_i32_129 : i32
    scf.if %232 {
      %c0_130 = arith.constant 0 : index
      %c0_131 = arith.constant 0 : index
      %233 = vector.load %arg7[%c0_130, %c0_131] : memref<8x32xf32, #tpu.memory_space<vmem>>, vector<8x32xf32>
      %c0_132 = arith.constant 0 : index
      %c0_133 = arith.constant 0 : index
      %234 = vector.load %arg4[%c0_132, %c0_133] : memref<32x1xf32, #tpu.memory_space<vmem>>, vector<32x1xf32>
      %cst_134 = arith.constant dense<0.000000e+00> : vector<8x1xf32>
      %235 = tpu.matmul %233, %234, %cst_134 {dimension_numbers = #tpu.dot_dimension_numbers<[1], [0], [0], [1], [0, 0, 1, 1], [], []>} : vector<8x32xf32>, vector<32x1xf32>, vector<8x1xf32> -> vector<8x1xf32>
      %c0_135 = arith.constant 0 : index
      %c0_136 = arith.constant 0 : index
      %236 = vector.load %arg5[%c0_135, %c0_136] : memref<1x1xf32, #tpu.memory_space<vmem>>, vector<1x1xf32>
      %237 = vector.broadcast %236 : vector<1x1xf32> to vector<8x1xf32>
      %238 = arith.addf %235, %237 : vector<8x1xf32>
      %c0_137 = arith.constant 0 : index
      %c0_138 = arith.constant 0 : index
      %239 = vector.load %arg6[%c0_137, %c0_138] : memref<8x1xf32, #tpu.memory_space<vmem>>, vector<8x1xf32>
      tpu.vector_store %arg6[%c0_137, %c0_138], %238 {strides = array<i32>} : memref<8x1xf32, #tpu.memory_space<vmem>>, vector<8x1xf32>,
    } else {
    }
    return
  }
  func.func @transform_0(%arg0: i32, %arg1: i32) -> (i32, i32, i32) {
    %c0_i32 = arith.constant 0 : i32
    %c0_i32_0 = arith.constant 0 : i32
    return %arg1, %arg0, %c0_i32 : i32, i32, i32
  }
  func.func @transform_1(%arg0: i32, %arg1: i32) -> (i32, i32) {
    %c0_i32 = arith.constant 0 : i32
    %c0_i32_0 = arith.constant 0 : i32
    %c0_i32_1 = arith.constant 0 : i32
    return %c0_i32, %c0_i32_0 : i32, i32
  }
  func.func @transform_2(%arg0: i32, %arg1: i32) -> (i32, i32) {
    %c0_i32 = arith.constant 0 : i32
    %c0_i32_0 = arith.constant 0 : i32
    %c0_i32_1 = arith.constant 0 : i32
    return %c0_i32, %c0_i32_0 : i32, i32
  }
  func.func @transform_3(%arg0: i32, %arg1: i32) -> (i32, i32) {
    %c0_i32 = arith.constant 0 : i32
    %c0_i32_0 = arith.constant 0 : i32
    %c0_i32_1 = arith.constant 0 : i32
    return %c0_i32, %c0_i32_0 : i32, i32
  }
  func.func @transform_4(%arg0: i32, %arg1: i32) -> (i32, i32) {
    %c0_i32 = arith.constant 0 : i32
    %c0_i32_0 = arith.constant 0 : i32
    return %arg0, %c0_i32 : i32, i32
  }
}

</mosaic_0001>

<bundles_post_ra>
// kernel: rnn_forward.4
= control target key start
LH: loop header
LB: loop body
LE: loop exit
PB: predicated region body
PF: predicated region fallthrough
CT: control target
= control target key end

     0   :  { %vm31_vm0 = vcmask 130048   ;;  %s299_s1 = inlined_call_operand.vmem [shape: f32[16,128], index: 1, kind: input, shape index: {}]   ;;  %s300_s0 = inlined_call_operand.vmem [shape: f32[64,16], index: 0, kind: input, shape index: {}]   ;;  %s301_s2 = inlined_call_operand.vmem [shape: f32[1,128], index: 2, kind: input, shape index: {}]   ;;  %s302_s3 = inlined_call_operand.vmem [shape: f32[64,128], index: 3, kind: output, shape index: {}]  }
   0x1   :  { %v22_v0 = vld [vmem:[%s299_s1] sm:$0xff]  ;;  %v23_v1 = vld [vmem:[%s299_s1 + $0x8] sm:$0xff]  ;;  %v16_v7 = vld [vmem:[%s300_s0 + $0x10] sm:$0xff] }
   0x2   :  { %v14_v2 = vld [vmem:[%s300_s0] sm:$0xff]  ;;  %v208_v3 = vpack.c.bf16 %v23_v1, %v22_v0  ;;  %v15_v5 = vld [vmem:[%s300_s0 + $0x8] sm:$0xff]  ;;  %v20_v8 = vld [vmem:[%s300_s0 + $0x30] sm:$0xff] }
   0x3   :  { %196 = vmatprep.mubr.msk.f32.mxu0 %vm31_vm0, %v14_v2  ;;  %v18_v4 = vld [vmem:[%s300_s0 + $0x20] sm:$0xff]  ;;  %v19_v6 = vld [vmem:[%s300_s0 + $0x28] sm:$0xff]  ;;  %v17_v9 = vld [vmem:[%s300_s0 + $0x18] sm:$0xff] }
   0x4   :  { %202 = vmatprep.mubr.msk.f32.mxu1 %vm31_vm0, %v18_v4  ;;  %209 = vmatprep.subr.bf16.mxu0 %v208_v3  ;;  %v21_v10 = vld [vmem:[%s300_s0 + $0x38] sm:$0xff]  ;;  %v173_v11 = vld [vmem:[%s301_s2] ss:$0 sm:$0xff] }
   0x5   :  { %212 = vmatprep.subr.bf16.mxu1 %v208_v3  ;;  %211 = vmatpush3.bf16.msra.mxu0 %v208_v3 }
   0x6   :  { %213 = vmatpush3.bf16.msra.mxu1 %v208_v3 }
   0x8   :  { %197 = vmatmul.mubr.msk.f32.vlgmr.msra.gmra.mrb[0].mxu0 %vm31_vm0, %v15_v5 }
   0x9   :  { %203 = vmatmul.mubr.msk.f32.vlgmr.msra.gmra.mrb[0].mxu1 %vm31_vm0, %v19_v6  ;;  %199 = vmatprep.mubr.msk.f32.mxu0 %vm31_vm0, %v16_v7 }
   0xa   :  { %205 = vmatprep.mubr.msk.f32.mxu1 %vm31_vm0, %v20_v8 }
   0xc   :  { %200 = vmatmul.mubr.msk.f32.gmra.mrb[2].mxu0 %vm31_vm0, %v17_v9 }
   0xd   :  { %206 = vmatmul.mubr.msk.f32.gmra.mrb[2].mxu1 %vm31_vm0, %v21_v10 }
  0xdb   :  { %v198_v12 = vpop.f32.mrb[0].mxu0 }
  0xdc   :  { %v204_v13 = vpop.f32.mrb[0].mxu1  ;;  %v128_v14 = vadd.f32 %v198_v12, %v173_v11  ;;  %v122_v16 = vpop.f32.mrb[1].mxu0 }
  0xdd   :  { %v148_v15 = vadd.f32 %v204_v13, %v173_v11  ;;  %v142_v17 = vpop.f32.mrb[1].mxu1  ;;  %v123_v18 = vadd.f32 %v173_v11, %v122_v16 }
  0xde   :  { %v143_v19 = vadd.f32 %v173_v11, %v142_v17  ;;  %162 = vst [vmem:[%s302_s3 + $0x8] sm:$0xff] %v128_v14 }
  0xdf   :  { %166 = vst [vmem:[%s302_s3 + $0x28] sm:$0xff] %v148_v15  ;;  %161 = vst [vmem:[%s302_s3] sm:$0xff] %v123_v18  ;;  %v201_v20 = vpop.f32.mrb[2].mxu0 }
  0xe0   :  { %165 = vst [vmem:[%s302_s3 + $0x20] sm:$0xff] %v143_v19  ;;  %v207_v21 = vpop.f32.mrb[2].mxu1  ;;  %v138_v22 = vadd.f32 %v201_v20, %v173_v11  ;;  %v132_v24 = vpop.f32.mrb[3].mxu0 }
  0xe1   :  { %v158_v23 = vadd.f32 %v207_v21, %v173_v11  ;;  %v152_v25 = vpop.f32.mrb[3].mxu1  ;;  %v133_v26 = vadd.f32 %v173_v11, %v132_v24 }
  0xe2   :  { %v153_v27 = vadd.f32 %v173_v11, %v152_v25  ;;  %164 = vst [vmem:[%s302_s3 + $0x18] sm:$0xff] %v138_v22 }
  0xe3   :  { %168 = vst [vmem:[%s302_s3 + $0x38] sm:$0xff] %v158_v23  ;;  %163 = vst [vmem:[%s302_s3 + $0x10] sm:$0xff] %v133_v26 }
  0xe4   :  { %167 = vst [vmem:[%s302_s3 + $0x30] sm:$0xff] %v153_v27 }

// kernel: rnn_forward.6
= control target key start
LH: loop header
LB: loop body
LE: loop exit
PB: predicated region body
PF: predicated region fallthrough
CT: control target
= control target key end

     0   :  { %vm33_vm0 = vcmask 261120   ;;  %s319_s1 = inlined_call_operand.vmem [shape: f32[32,128], index: 1, kind: input, shape index: {}]   ;;  %s320_s0 = inlined_call_operand.vmem [shape: f32[64,32], index: 0, kind: input, shape index: {}]   ;;  %s321_s2 = inlined_call_operand.vmem [shape: f32[1,128], index: 2, kind: input, shape index: {}]   ;;  %s322_s3 = inlined_call_operand.vmem [shape: f32[64,128], index: 3, kind: output, shape index: {}]  }
   0x1   :  { %v22_v0 = vld [vmem:[%s319_s1] sm:$0xff]  ;;  %v23_v1 = vld [vmem:[%s319_s1 + $0x8] sm:$0xff]  ;;  %v24_v2 = vld [vmem:[%s319_s1 + $0x10] sm:$0xff] }
   0x2   :  { %v216_v3 = vpack.c.bf16 %v23_v1, %v22_v0  ;;  %v25_v4 = vld [vmem:[%s319_s1 + $0x18] sm:$0xff]  ;;  %v14_v5 = vld [vmem:[%s320_s0] sm:$0xff]  ;;  %v15_v8 = vld [vmem:[%s320_s0 + $0x8] sm:$0xff] }
   0x3   :  { %v18_v6 = vld [vmem:[%s320_s0 + $0x20] sm:$0xff]  ;;  %v220_v7 = vpack.c.bf16 %v25_v4, %v24_v2  ;;  %204 = vmatprep.mubr.msk.f32.mxu0 %vm33_vm0, %v14_v5  ;;  %v19_v9 = vld [vmem:[%s320_s0 + $0x28] sm:$0xff]  ;;  %v16_v10 = vld [vmem:[%s320_s0 + $0x10] sm:$0xff] }
   0x4   :  { %210 = vmatprep.mubr.msk.f32.mxu1 %vm33_vm0, %v18_v6  ;;  %217 = vmatprep.subr.bf16.mxu0 %v216_v3  ;;  %v20_v11 = vld [vmem:[%s320_s0 + $0x30] sm:$0xff]  ;;  %v17_v12 = vld [vmem:[%s320_s0 + $0x18] sm:$0xff]  ;;  %v175_v14 = vld [vmem:[%s321_s2] ss:$0 sm:$0xff] }
   0x5   :  { %224 = vmatprep.subr.bf16.mxu1 %v216_v3  ;;  %219 = vmatpush3.bf16.msra.mxu0 %v216_v3  ;;  %v21_v13 = vld [vmem:[%s320_s0 + $0x38] sm:$0xff] }
   0x6   :  { %226 = vmatpush3.bf16.msra.mxu1 %v216_v3  ;;  %221 = vmatprep.subr.bf16.mxu0 %v220_v7 }
   0x7   :  { %225 = vmatprep.subr.bf16.mxu1 %v220_v7 }
   0x9   :  { %223 = vmatpush3.bf16.msra.mxu0 %v220_v7 }
   0xa   :  { %227 = vmatpush3.bf16.msra.mxu1 %v220_v7 }
   0xc   :  { %205 = vmatmul.mubr.msk.f32.vlgmr.msra.gmra.mrb[0].mxu0 %vm33_vm0, %v15_v8 }
   0xd   :  { %211 = vmatmul.mubr.msk.f32.vlgmr.msra.gmra.mrb[0].mxu1 %vm33_vm0, %v19_v9  ;;  %207 = vmatprep.mubr.msk.f32.mxu0 %vm33_vm0, %v16_v10 }
   0xe   :  { %213 = vmatprep.mubr.msk.f32.mxu1 %vm33_vm0, %v20_v11 }
  0x10   :  { %208 = vmatmul.mubr.msk.f32.gmra.mrb[2].mxu0 %vm33_vm0, %v17_v12 }
  0x11   :  { %214 = vmatmul.mubr.msk.f32.gmra.mrb[2].mxu1 %vm33_vm0, %v21_v13 }
  0xdf   :  { %v206_v15 = vpop.f32.mrb[0].mxu0 }
  0xe0   :  { %v212_v16 = vpop.f32.mrb[0].mxu1  ;;  %v130_v17 = vadd.f32 %v206_v15, %v175_v14  ;;  %v124_v19 = vpop.f32.mrb[1].mxu0 }
  0xe1   :  { %v150_v18 = vadd.f32 %v212_v16, %v175_v14  ;;  %v144_v20 = vpop.f32.mrb[1].mxu1  ;;  %v125_v21 = vadd.f32 %v175_v14, %v124_v19 }
  0xe2   :  { %v145_v22 = vadd.f32 %v175_v14, %v144_v20  ;;  %164 = vst [vmem:[%s322_s3 + $0x8] sm:$0xff] %v130_v17 }
  0xe3   :  { %168 = vst [vmem:[%s322_s3 + $0x28] sm:$0xff] %v150_v18  ;;  %163 = vst [vmem:[%s322_s3] sm:$0xff] %v125_v21  ;;  %v209_v23 = vpop.f32.mrb[2].mxu0 }
  0xe4   :  { %167 = vst [vmem:[%s322_s3 + $0x20] sm:$0xff] %v145_v22  ;;  %v215_v24 = vpop.f32.mrb[2].mxu1  ;;  %v140_v25 = vadd.f32 %v209_v23, %v175_v14  ;;  %v134_v27 = vpop.f32.mrb[3].mxu0 }
  0xe5   :  { %v160_v26 = vadd.f32 %v215_v24, %v175_v14  ;;  %v154_v28 = vpop.f32.mrb[3].mxu1  ;;  %v135_v29 = vadd.f32 %v175_v14, %v134_v27 }
  0xe6   :  { %v155_v30 = vadd.f32 %v175_v14, %v154_v28  ;;  %166 = vst [vmem:[%s322_s3 + $0x18] sm:$0xff] %v140_v25 }
  0xe7   :  { %170 = vst [vmem:[%s322_s3 + $0x38] sm:$0xff] %v160_v26  ;;  %165 = vst [vmem:[%s322_s3 + $0x10] sm:$0xff] %v135_v29 }
  0xe8   :  { %169 = vst [vmem:[%s322_s3 + $0x30] sm:$0xff] %v155_v30 }

// kernel: rnn_forward.5
= control target key start
LH: loop header
LB: loop body
LE: loop exit
PB: predicated region body
PF: predicated region fallthrough
CT: control target
= control target key end

     0   :  { %vm15_vm0 = vcmask 261120   ;;  %v1228_v0 = vmov 0.0|0.0   ;;  %vm1229_vm1 = vmmov 0   ;;  %v1230_v4 = vmov 0.0   ;;  %s1231_s18 = smov 32   ;;  %s1232_s19 = smov 96   ;;  %s1480_s1 = inlined_call_operand.vmem [shape: f32[32,128], index: 1, kind: input, shape index: {}]   ;;  %s1481_s0 = inlined_call_operand.vmem [shape: f32[8,8,128], index: 0, kind: input, shape index: {}]   ;;  %s1482_s2 = inlined_call_operand.vmem [shape: f32[8,8,32], index: 2, kind: output, shape index: {}]  }
   0x1   :  { %1142 = vmatprep.subr.bf16.mxu0 %v1228_v0  ;;  %v24_v1 = vld [vmem:[%s1480_s1] sm:$0xff]  ;;  %v25_v2 = vld [vmem:[%s1480_s1 + $0x8] sm:$0xff]  ;;  %v26_v3 = vld [vmem:[%s1480_s1 + $0x10] sm:$0xff]  ;;  %1062 = vmatprep.mubr.msk.f32.mxu0 %vm1229_vm1, %v1230_v4  ;;  %16 = vst.msk [vmem:[#allocation2] sm:$0xff] %vm15_vm0, %v1230_v4  ;;  %v18_v9 = vlaneseq  ;;  %s1233_s20 = smov 64  }
   0x2   :  { %17 = vst.msk [vmem:[#allocation3] sm:$0xff] %vm15_vm0, %v1230_v4  ;;  %v1265_v5 = vpack.c.bf16 %v25_v2, %v24_v1  ;;  %v27_v6 = vld [vmem:[%s1480_s1 + $0x18] sm:$0xff]  ;;  %1148 = vmatprep.subr.bf16.mxu1 %v1228_v0  ;;  %1073 = vmatprep.mubr.msk.f32.mxu1 %vm1229_vm1, %v1230_v4  ;;  %v23_v11 = vld [vmem:[%s1481_s0] sm:$0xff]  ;;  %v993_v35 = vld [vmem:[%s1481_s0 + $0x8] sm:$0xff] }
   0x3   :  { %v1274_v7 = vpack.c.bf16 %v27_v6, %v26_v3  ;;  %v1290_v10 = vand.u32 127, %v18_v9  ;;  %v996_v58 = vld [vmem:[%s1481_s0 + $0x10] sm:$0xff] }
   0x4   :  { %1144 = vmatpush3.bf16.msra.mxu0 %v1265_v5  ;;  %1150 = vmatpush3.bf16.msra.mxu1 %v1265_v5 }
   0x5   :  { %1145 = vmatprep.subr.bf16.mxu0 %v1228_v0  ;;  %1151 = vmatprep.subr.bf16.mxu1 %v1228_v0  ;;  %vm20_vm2 = vcmp.lt.s32.totalorder %v1290_v10, 96 }
   0x8   :  { %1147 = vmatpush3.bf16.msra.mxu0 %v1274_v7  ;;  %v21_v8 = vld [vmem:[#allocation2] sm:$0xff]  ;;  %1153 = vmatpush3.bf16.msra.mxu1 %v1274_v7 }
   0x9   :  { %1154 = vmatprep.subr.bf16.mxu0 %v1228_v0  ;;  %1160 = vmatprep.subr.bf16.mxu1 %v1228_v0  ;;  %v22_v21 = vld [vmem:[#allocation3] sm:$0xff] }
   0xb   :  { %1063 = vmatmul.mubr.msk.f32.vlgmr.msra.gmra.mrb[0].mxu0 %vm15_vm0, %v21_v8 }
   0xc   :  { %1156 = vmatpush3.bf16.msra.mxu0 %v1265_v5  ;;  %1084 = vmatprep.mubr.msk.f32.mxu0 %vm1229_vm1, %v1230_v4 }
   0xd   :  { %1157 = vmatprep.subr.bf16.mxu0 %v1228_v0 }
  0x10   :  { %1159 = vmatpush3.bf16.msra.mxu0 %v1274_v7 }
  0x11   :  { %1166 = vmatprep.subr.bf16.mxu0 %v1228_v0 }
  0xde   :  { %v98_v12 = vpop.f32.mrb[0].mxu0 }
  0xdf   :  { %v102_v13 = vadd.f32 %v98_v12, %v23_v11  ;;  %v1064_v14 = vpop.f32.mrb[1].mxu0 }
  0xe1   :  { %v103_v15 = vmul.f32 0.5, %v102_v13 }
  0xe3   :  { %v104_v16 = vsel %vm20_vm2, %v103_v15, %v102_v13 }
  0xe4   :  { %1196 = vtanh.f32 %v104_v16 }
  0xee   :  { %v1197_v17 = vpop.eup %1196 }
  0xef   :  { %v106_v18 = vmul.f32 0.5, %v1197_v17 }
  0xf1   :  { %v107_v19 = vadd.f32 0.5, %v106_v18 }
  0xf3   :  { %v108_v20 = vsel %vm20_vm2, %v107_v19, %v1197_v17 }
  0xf4   :  { %115 = vrot.lane.b32.xlu0 %v108_v20, %s1231_s18 }
  0xf8   :  { %110 = vrot.lane.b32.xlu0 %v22_v21, %s1231_s18 }
 0x166   :  { %v116_v22 = vpop.permute.xlu0 %115 }
 0x167   :  { %v118_v23 = vmul.f32 %v116_v22, %v108_v20  ;;  %v999_v22 = vld [vmem:[%s1481_s0 + $0x18] sm:$0xff] }
 0x169   :  { %120 = vrot.lane.b32.xlu1 %v118_v23, %s1231_s18 }
 0x16a   :  { %v111_v24 = vpop.permute.xlu0 %110 }
 0x16b   :  { %v113_v25 = vmul.f32 %v111_v24, %v108_v20 }
 0x1db   :  { %v121_v26 = vpop.permute.xlu1 %120 }
 0x1dc   :  { %v123_v27 = vadd.f32 %v121_v26, %v113_v25 }
 0x1de   :  { %1198 = vtanh.f32 %v123_v27 }
 0x1e8   :  { %v1199_v28 = vpop.eup %1198 }
 0x1e9   :  { %126 = vrot.lane.b32.xlu1 %v1199_v28, %s1231_s18 }
 0x1ed   :  { %136 = vrot.lane.b32.xlu1 %v123_v27, %s1232_s19 }
 0x25b   :  { %v127_v29 = vpop.permute.xlu1 %126 }
 0x25c   :  { %v129_v30 = vmul.f32 %v127_v29, %v108_v20 }
 0x25e   :  { %131 = vrot.lane.b32.xlu0 %v129_v30, %s1233_s20 }
 0x25f   :  { %v137_v31 = vpop.permute.xlu1 %136 }
 0x260   :  { %139 = vst.msk [vmem:[#allocation3] sm:$0xff] %vm15_vm0, %v137_v31 }
 0x267   :  { %v142_v32 = vld [vmem:[#allocation3] sm:$0xff] }
 0x268   :  { %230 = vrot.lane.b32.xlu1 %v142_v32, %s1231_s18 }
 0x2d0   :  { %v132_v33 = vpop.permute.xlu0 %131 }
 0x2d1   :  { %134 = vst.msk [vmem:[#allocation2] sm:$0xff] %vm15_vm0, %v132_v33  ;;  %140 = vst.msk [vmem:[%s1482_s2] sm:$0xff] %vm15_vm0, %v132_v33 }
 0x2d8   :  { %v141_v34 = vld [vmem:[#allocation2] sm:$0xff] }
 0x2d9   :  { %1074 = vmatmul.mubr.msk.f32.vlgmr.msra.gmra.mrb[0].mxu1 %vm15_vm0, %v141_v34 }
 0x2da   :  { %1162 = vmatpush3.bf16.msra.mxu1 %v1265_v5  ;;  %1095 = vmatprep.mubr.msk.f32.mxu1 %vm1229_vm1, %v1230_v4  ;;  %v231_v47 = vpop.permute.xlu1 %230 }
 0x2db   :  { %1163 = vmatprep.subr.bf16.mxu1 %v1228_v0 }
 0x2de   :  { %1165 = vmatpush3.bf16.msra.mxu1 %v1274_v7 }
 0x2df   :  { %1172 = vmatprep.subr.bf16.mxu1 %v1228_v0 }
 0x3ac   :  { %v218_v36 = vpop.f32.mrb[0].mxu1 }
 0x3ad   :  { %v222_v37 = vadd.f32 %v993_v35, %v218_v36  ;;  %v1075_v38 = vpop.f32.mrb[1].mxu1 }
 0x3af   :  { %v223_v39 = vmul.f32 0.5, %v222_v37 }
 0x3b1   :  { %v224_v40 = vsel %vm20_vm2, %v223_v39, %v222_v37 }
 0x3b2   :  { %1200 = vtanh.f32 %v224_v40 }
 0x3bc   :  { %v1201_v41 = vpop.eup %1200 }
 0x3bd   :  { %v226_v42 = vmul.f32 0.5, %v1201_v41 }
 0x3bf   :  { %v227_v43 = vadd.f32 0.5, %v226_v42 }
 0x3c1   :  { %v228_v44 = vsel %vm20_vm2, %v227_v43, %v1201_v41 }
 0x3c2   :  { %235 = vrot.lane.b32.xlu0 %v228_v44, %s1231_s18  ;;  %v233_v48 = vmul.f32 %v231_v47, %v228_v44 }
 0x434   :  { %v236_v45 = vpop.permute.xlu0 %235 }
 0x435   :  { %v238_v46 = vmul.f32 %v236_v45, %v228_v44  ;;  %v1002_v45 = vld [vmem:[%s1481_s0 + $0x20] sm:$0xff] }
 0x437   :  { %240 = vrot.lane.b32.xlu0 %v238_v46, %s1231_s18 }
 0x4a9   :  { %v241_v49 = vpop.permute.xlu0 %240 }
 0x4aa   :  { %v243_v50 = vadd.f32 %v241_v49, %v233_v48 }
 0x4ac   :  { %1202 = vtanh.f32 %v243_v50 }
 0x4b6   :  { %v1203_v51 = vpop.eup %1202 }
 0x4b7   :  { %246 = vrot.lane.b32.xlu1 %v1203_v51, %s1231_s18 }
 0x4bb   :  { %256 = vrot.lane.b32.xlu1 %v243_v50, %s1232_s19 }
 0x529   :  { %v247_v52 = vpop.permute.xlu1 %246 }
 0x52a   :  { %v249_v53 = vmul.f32 %v247_v52, %v228_v44 }
 0x52c   :  { %251 = vrot.lane.b32.xlu0 %v249_v53, %s1233_s20 }
 0x52d   :  { %v257_v54 = vpop.permute.xlu1 %256 }
 0x52e   :  { %259 = vst.msk [vmem:[#allocation3] sm:$0xff] %vm15_vm0, %v257_v54 }
 0x535   :  { %v263_v55 = vld [vmem:[#allocation3] sm:$0xff] }
 0x536   :  { %351 = vrot.lane.b32.xlu1 %v263_v55, %s1231_s18 }
 0x59e   :  { %v252_v56 = vpop.permute.xlu0 %251 }
 0x59f   :  { %254 = vst.msk [vmem:[#allocation2] sm:$0xff] %vm15_vm0, %v252_v56  ;;  %995 = vst.msk [vmem:[%s1482_s2 + $0x8] sm:$0xff] %vm15_vm0, %v252_v56 }
 0x5a6   :  { %v262_v57 = vld [vmem:[#allocation2] sm:$0xff] }
 0x5a7   :  { %1085 = vmatmul.mubr.msk.f32.vlgmr.msra.gmra.mrb[2].mxu0 %vm15_vm0, %v262_v57 }
 0x5a8   :  { %1168 = vmatpush3.bf16.msra.mxu0 %v1265_v5  ;;  %1106 = vmatprep.mubr.msk.f32.mxu0 %vm1229_vm1, %v1230_v4  ;;  %v352_v11 = vpop.permute.xlu1 %351 }
 0x5a9   :  { %1169 = vmatprep.subr.bf16.mxu0 %v1228_v0 }
 0x5ac   :  { %1171 = vmatpush3.bf16.msra.mxu0 %v1274_v7 }
 0x5ad   :  { %1178 = vmatprep.subr.bf16.mxu0 %v1228_v0 }
 0x67a   :  { %v339_v59 = vpop.f32.mrb[2].mxu0 }
 0x67b   :  { %v343_v60 = vadd.f32 %v996_v58, %v339_v59  ;;  %v1086_v61 = vpop.f32.mrb[3].mxu0 }
 0x67d   :  { %v344_v62 = vmul.f32 0.5, %v343_v60 }
 0x67f   :  { %v345_v63 = vsel %vm20_vm2, %v344_v62, %v343_v60 }
 0x680   :  { %1204 = vtanh.f32 %v345_v63 }
 0x68a   :  { %v1205_v1 = vpop.eup %1204 }
 0x68b   :  { %v347_v2 = vmul.f32 0.5, %v1205_v1 }
 0x68d   :  { %v348_v3 = vadd.f32 0.5, %v347_v2 }
 0x68f   :  { %v349_v6 = vsel %vm20_vm2, %v348_v3, %v1205_v1 }
 0x690   :  { %356 = vrot.lane.b32.xlu0 %v349_v6, %s1231_s18  ;;  %v354_v12 = vmul.f32 %v352_v11, %v349_v6 }
 0x702   :  { %v357_v8 = vpop.permute.xlu0 %356 }
 0x703   :  { %v359_v9 = vmul.f32 %v357_v8, %v349_v6  ;;  %v1005_v8 = vld [vmem:[%s1481_s0 + $0x28] sm:$0xff] }
 0x705   :  { %361 = vrot.lane.b32.xlu0 %v359_v9, %s1231_s18 }
 0x777   :  { %v362_v13 = vpop.permute.xlu0 %361 }
 0x778   :  { %v364_v14 = vadd.f32 %v362_v13, %v354_v12 }
 0x77a   :  { %1206 = vtanh.f32 %v364_v14 }
 0x784   :  { %v1207_v15 = vpop.eup %1206 }
 0x785   :  { %367 = vrot.lane.b32.xlu1 %v1207_v15, %s1231_s18 }
 0x789   :  { %377 = vrot.lane.b32.xlu1 %v364_v14, %s1232_s19 }
 0x7f7   :  { %v368_v16 = vpop.permute.xlu1 %367 }
 0x7f8   :  { %v370_v17 = vmul.f32 %v368_v16, %v349_v6 }
 0x7fa   :  { %372 = vrot.lane.b32.xlu0 %v370_v17, %s1233_s20 }
 0x7fb   :  { %v378_v18 = vpop.permute.xlu1 %377 }
 0x7fc   :  { %380 = vst.msk [vmem:[#allocation3] sm:$0xff] %vm15_vm0, %v378_v18 }
 0x803   :  { %v384_v19 = vld [vmem:[#allocation3] sm:$0xff] }
 0x804   :  { %472 = vrot.lane.b32.xlu1 %v384_v19, %s1231_s18 }
 0x86c   :  { %v373_v20 = vpop.permute.xlu0 %372 }
 0x86d   :  { %375 = vst.msk [vmem:[#allocation2] sm:$0xff] %vm15_vm0, %v373_v20  ;;  %998 = vst.msk [vmem:[%s1482_s2 + $0x10] sm:$0xff] %vm15_vm0, %v373_v20 }
 0x874   :  { %v383_v21 = vld [vmem:[#allocation2] sm:$0xff] }
 0x875   :  { %1096 = vmatmul.mubr.msk.f32.vlgmr.msra.gmra.mrb[2].mxu1 %vm15_vm0, %v383_v21 }
 0x876   :  { %1174 = vmatpush3.bf16.msra.mxu1 %v1265_v5  ;;  %1117 = vmatprep.mubr.msk.f32.mxu1 %vm1229_vm1, %v1230_v4  ;;  %v473_v34 = vpop.permute.xlu1 %472 }
 0x877   :  { %1175 = vmatprep.subr.bf16.mxu1 %v1228_v0 }
 0x87a   :  { %1177 = vmatpush3.bf16.msra.mxu1 %v1274_v7 }
 0x87b   :  { %1184 = vmatprep.subr.bf16.mxu1 %v1228_v0 }
 0x948   :  { %v460_v23 = vpop.f32.mrb[2].mxu1 }
 0x949   :  { %v464_v24 = vadd.f32 %v999_v22, %v460_v23  ;;  %v1097_v25 = vpop.f32.mrb[3].mxu1 }
 0x94b   :  { %v465_v26 = vmul.f32 0.5, %v464_v24 }
 0x94d   :  { %v466_v27 = vsel %vm20_vm2, %v465_v26, %v464_v24 }
 0x94e   :  { %1208 = vtanh.f32 %v466_v27 }
 0x958   :  { %v1209_v28 = vpop.eup %1208 }
 0x959   :  { %v468_v29 = vmul.f32 0.5, %v1209_v28 }
 0x95b   :  { %v469_v30 = vadd.f32 0.5, %v468_v29 }
 0x95d   :  { %v470_v31 = vsel %vm20_vm2, %v469_v30, %v1209_v28  ;;  %v1008_v28 = vld [vmem:[%s1481_s0 + $0x30] sm:$0xff] }
 0x95e   :  { %477 = vrot.lane.b32.xlu0 %v470_v31, %s1231_s18  ;;  %v475_v35 = vmul.f32 %v473_v34, %v470_v31 }
 0x9d0   :  { %v478_v32 = vpop.permute.xlu0 %477 }
 0x9d1   :  { %v480_v33 = vmul.f32 %v478_v32, %v470_v31 }
 0x9d3   :  { %482 = vrot.lane.b32.xlu0 %v480_v33, %s1231_s18 }
 0xa45   :  { %v483_v36 = vpop.permute.xlu0 %482 }
 0xa46   :  { %v485_v37 = vadd.f32 %v483_v36, %v475_v35 }
 0xa48   :  { %1210 = vtanh.f32 %v485_v37 }
 0xa52   :  { %v1211_v38 = vpop.eup %1210 }
 0xa53   :  { %488 = vrot.lane.b32.xlu1 %v1211_v38, %s1231_s18 }
 0xa57   :  { %498 = vrot.lane.b32.xlu1 %v485_v37, %s1232_s19 }
 0xac5   :  { %v489_v39 = vpop.permute.xlu1 %488 }
 0xac6   :  { %v491_v40 = vmul.f32 %v489_v39, %v470_v31 }
 0xac8   :  { %493 = vrot.lane.b32.xlu0 %v491_v40, %s1233_s20 }
 0xac9   :  { %v499_v41 = vpop.permute.xlu1 %498 }
 0xaca   :  { %501 = vst.msk [vmem:[#allocation3] sm:$0xff] %vm15_vm0, %v499_v41 }
 0xad1   :  { %v505_v42 = vld [vmem:[#allocation3] sm:$0xff] }
 0xad2   :  { %593 = vrot.lane.b32.xlu1 %v505_v42, %s1231_s18 }
 0xb3a   :  { %v494_v43 = vpop.permute.xlu0 %493 }
 0xb3b   :  { %496 = vst.msk [vmem:[#allocation2] sm:$0xff] %vm15_vm0, %v494_v43  ;;  %1001 = vst.msk [vmem:[%s1482_s2 + $0x18] sm:$0xff] %vm15_vm0, %v494_v43 }
 0xb42   :  { %v504_v44 = vld [vmem:[#allocation2] sm:$0xff] }
 0xb43   :  { %1107 = vmatmul.mubr.msk.f32.vlgmr.msra.gmra.mrb[4].mxu0 %vm15_vm0, %v504_v44 }
 0xb44   :  { %1180 = vmatpush3.bf16.msra.mxu0 %v1265_v5  ;;  %1128 = vmatprep.mubr.msk.f32.mxu0 %vm1229_vm1, %v1230_v4  ;;  %v594_v57 = vpop.permute.xlu1 %593 }
 0xb45   :  { %1181 = vmatprep.subr.bf16.mxu0 %v1228_v0 }
 0xb48   :  { %1183 = vmatpush3.bf16.msra.mxu0 %v1274_v7 }
 0xc16   :  { %v581_v46 = vpop.f32.mrb[4].mxu0 }
 0xc17   :  { %v585_v47 = vadd.f32 %v1002_v45, %v581_v46  ;;  %v1108_v48 = vpop.f32.mrb[5].mxu0 }
 0xc19   :  { %v586_v49 = vmul.f32 0.5, %v585_v47 }
 0xc1b   :  { %v587_v50 = vsel %vm20_vm2, %v586_v49, %v585_v47 }
 0xc1c   :  { %1212 = vtanh.f32 %v587_v50 }
 0xc26   :  { %v1213_v51 = vpop.eup %1212 }
 0xc27   :  { %v589_v52 = vmul.f32 0.5, %v1213_v51 }
 0xc29   :  { %v590_v53 = vadd.f32 0.5, %v589_v52 }
 0xc2b   :  { %v591_v54 = vsel %vm20_vm2, %v590_v53, %v1213_v51  ;;  %v1011_v51 = vld [vmem:[%s1481_s0 + $0x38] sm:$0xff] }
 0xc2c   :  { %598 = vrot.lane.b32.xlu0 %v591_v54, %s1231_s18  ;;  %v596_v58 = vmul.f32 %v594_v57, %v591_v54 }
 0xc9e   :  { %v599_v55 = vpop.permute.xlu0 %598 }
 0xc9f   :  { %v601_v56 = vmul.f32 %v599_v55, %v591_v54 }
 0xca1   :  { %603 = vrot.lane.b32.xlu0 %v601_v56, %s1231_s18 }
 0xd13   :  { %v604_v59 = vpop.permute.xlu0 %603 }
 0xd14   :  { %v606_v60 = vadd.f32 %v604_v59, %v596_v58 }
 0xd16   :  { %1214 = vtanh.f32 %v606_v60 }
 0xd20   :  { %v1215_v61 = vpop.eup %1214 }
 0xd21   :  { %609 = vrot.lane.b32.xlu1 %v1215_v61, %s1231_s18 }
 0xd25   :  { %619 = vrot.lane.b32.xlu1 %v606_v60, %s1232_s19 }
 0xd93   :  { %v610_v62 = vpop.permute.xlu1 %609 }
 0xd94   :  { %v612_v63 = vmul.f32 %v610_v62, %v591_v54 }
 0xd96   :  { %614 = vrot.lane.b32.xlu0 %v612_v63, %s1233_s20 }
 0xd97   :  { %v620_v1 = vpop.permute.xlu1 %619 }
 0xd98   :  { %622 = vst.msk [vmem:[#allocation3] sm:$0xff] %vm15_vm0, %v620_v1 }
 0xd9f   :  { %v626_v2 = vld [vmem:[#allocation3] sm:$0xff] }
 0xda0   :  { %714 = vrot.lane.b32.xlu1 %v626_v2, %s1231_s18 }
 0xe08   :  { %v615_v3 = vpop.permute.xlu0 %614 }
 0xe09   :  { %617 = vst.msk [vmem:[#allocation2] sm:$0xff] %vm15_vm0, %v615_v3  ;;  %1004 = vst.msk [vmem:[%s1482_s2 + $0x20] sm:$0xff] %vm15_vm0, %v615_v3 }
 0xe10   :  { %v625_v6 = vld [vmem:[#allocation2] sm:$0xff] }
 0xe11   :  { %1118 = vmatmul.mubr.msk.f32.vlgmr.msra.gmra.mrb[4].mxu1 %vm15_vm0, %v625_v6 }
 0xe12   :  { %1186 = vmatpush3.bf16.msra.mxu1 %v1265_v5  ;;  %1139 = vmatprep.mubr.msk.f32.mxu1 %vm1229_vm1, %v1230_v4  ;;  %v715_v17 = vpop.permute.xlu1 %714 }
 0xe13   :  { %1187 = vmatprep.subr.bf16.mxu1 %v1228_v0 }
 0xe16   :  { %1189 = vmatpush3.bf16.msra.mxu1 %v1274_v7 }
 0xee4   :  { %v702_v9 = vpop.f32.mrb[4].mxu1 }
 0xee5   :  { %v706_v11 = vadd.f32 %v1005_v8, %v702_v9  ;;  %v1119_v12 = vpop.f32.mrb[5].mxu1 }
 0xee7   :  { %v707_v13 = vmul.f32 0.5, %v706_v11 }
 0xee9   :  { %v708_v14 = vsel %vm20_vm2, %v707_v13, %v706_v11 }
 0xeea   :  { %1216 = vtanh.f32 %v708_v14 }
 0xef4   :  { %v1217_v5 = vpop.eup %1216 }
 0xef5   :  { %v710_v15 = vmul.f32 0.5, %v1217_v5 }
 0xef7   :  { %v711_v16 = vadd.f32 0.5, %v710_v15 }
 0xef9   :  { %v712_v0 = vsel %vm20_vm2, %v711_v16, %v1217_v5 }
 0xefa   :  { %719 = vrot.lane.b32.xlu0 %v712_v0, %s1231_s18  ;;  %v717_v18 = vmul.f32 %v715_v17, %v712_v0 }
 0xf6c   :  { %v720_v4 = vpop.permute.xlu0 %719 }
 0xf6d   :  { %v722_v7 = vmul.f32 %v720_v4, %v712_v0 }
 0xf6f   :  { %724 = vrot.lane.b32.xlu0 %v722_v7, %s1231_s18 }
 0xfe1   :  { %v725_v19 = vpop.permute.xlu0 %724 }
 0xfe2   :  { %v727_v20 = vadd.f32 %v725_v19, %v717_v18 }
 0xfe4   :  { %1218 = vtanh.f32 %v727_v20 }
 0xfee   :  { %v1219_v21 = vpop.eup %1218 }
 0xfef   :  { %730 = vrot.lane.b32.xlu1 %v1219_v21, %s1231_s18 }
 0xff3   :  { %740 = vrot.lane.b32.xlu1 %v727_v20, %s1232_s19 }
0x1061   :  { %v731_v22 = vpop.permute.xlu1 %730 }
0x1062   :  { %v733_v23 = vmul.f32 %v731_v22, %v712_v0 }
0x1064   :  { %735 = vrot.lane.b32.xlu0 %v733_v23, %s1233_s20 }
0x1065   :  { %v741_v24 = vpop.permute.xlu1 %740 }
0x1066   :  { %743 = vst.msk [vmem:[#allocation3] sm:$0xff] %vm15_vm0, %v741_v24 }
0x106d   :  { %v747_v25 = vld [vmem:[#allocation3] sm:$0xff] }
0x106e   :  { %835 = vrot.lane.b32.xlu1 %v747_v25, %s1231_s18 }
0x10d6   :  { %v736_v26 = vpop.permute.xlu0 %735 }
0x10d7   :  { %738 = vst.msk [vmem:[#allocation2] sm:$0xff] %vm15_vm0, %v736_v26  ;;  %1007 = vst.msk [vmem:[%s1482_s2 + $0x28] sm:$0xff] %vm15_vm0, %v736_v26 }
0x10de   :  { %v746_v27 = vld [vmem:[#allocation2] sm:$0xff] }
0x10df   :  { %1129 = vmatmul.mubr.msk.f32.vlgmr.msra.gmra.mrb[6].mxu0 %vm15_vm0, %v746_v27 }
0x10e0   :  { %v836_v40 = vpop.permute.xlu1 %835 }
0x11b2   :  { %v823_v29 = vpop.f32.mrb[6].mxu0 }
0x11b3   :  { %v827_v30 = vadd.f32 %v1008_v28, %v823_v29  ;;  %v1130_v31 = vpop.f32.mrb[7].mxu0 }
0x11b5   :  { %v828_v32 = vmul.f32 0.5, %v827_v30 }
0x11b7   :  { %v829_v33 = vsel %vm20_vm2, %v828_v32, %v827_v30 }
0x11b8   :  { %1220 = vtanh.f32 %v829_v33 }
0x11c2   :  { %v1221_v34 = vpop.eup %1220 }
0x11c3   :  { %v831_v35 = vmul.f32 0.5, %v1221_v34 }
0x11c5   :  { %v832_v36 = vadd.f32 0.5, %v831_v35 }
0x11c7   :  { %v833_v37 = vsel %vm20_vm2, %v832_v36, %v1221_v34 }
0x11c8   :  { %840 = vrot.lane.b32.xlu0 %v833_v37, %s1231_s18  ;;  %v838_v41 = vmul.f32 %v836_v40, %v833_v37 }
0x123a   :  { %v841_v38 = vpop.permute.xlu0 %840 }
0x123b   :  { %v843_v39 = vmul.f32 %v841_v38, %v833_v37 }
0x123d   :  { %845 = vrot.lane.b32.xlu0 %v843_v39, %s1231_s18 }
0x12af   :  { %v846_v42 = vpop.permute.xlu0 %845 }
0x12b0   :  { %v848_v43 = vadd.f32 %v846_v42, %v838_v41 }
0x12b2   :  { %1222 = vtanh.f32 %v848_v43 }
0x12bc   :  { %v1223_v44 = vpop.eup %1222 }
0x12bd   :  { %851 = vrot.lane.b32.xlu1 %v1223_v44, %s1231_s18 }
0x12c1   :  { %861 = vrot.lane.b32.xlu1 %v848_v43, %s1232_s19 }
0x132f   :  { %v852_v45 = vpop.permute.xlu1 %851 }
0x1330   :  { %v854_v46 = vmul.f32 %v852_v45, %v833_v37 }
0x1332   :  { %856 = vrot.lane.b32.xlu0 %v854_v46, %s1233_s20 }
0x1333   :  { %v862_v47 = vpop.permute.xlu1 %861 }
0x1334   :  { %864 = vst.msk [vmem:[#allocation3] sm:$0xff] %vm15_vm0, %v862_v47 }
0x133b   :  { %v868_v48 = vld [vmem:[#allocation3] sm:$0xff] }
0x133c   :  { %956 = vrot.lane.b32.xlu1 %v868_v48, %s1231_s18 }
0x13a4   :  { %v857_v49 = vpop.permute.xlu0 %856 }
0x13a5   :  { %859 = vst.msk [vmem:[#allocation2] sm:$0xff] %vm15_vm0, %v857_v49  ;;  %1010 = vst.msk [vmem:[%s1482_s2 + $0x30] sm:$0xff] %vm15_vm0, %v857_v49 }
0x13ac   :  { %v867_v50 = vld [vmem:[#allocation2] sm:$0xff] }
0x13ad   :  { %1140 = vmatmul.mubr.msk.f32.vlgmr.msra.gmra.mrb[6].mxu1 %vm15_vm0, %v867_v50 }
0x13ae   :  { %v957_v63 = vpop.permute.xlu1 %956 }
0x1480   :  { %v944_v52 = vpop.f32.mrb[6].mxu1 }
0x1481   :  { %v948_v53 = vadd.f32 %v1011_v51, %v944_v52  ;;  %v1141_v54 = vpop.f32.mrb[7].mxu1 }
0x1483   :  { %v949_v55 = vmul.f32 0.5, %v948_v53 }
0x1485   :  { %v950_v56 = vsel %vm20_vm2, %v949_v55, %v948_v53 }
0x1486   :  { %1224 = vtanh.f32 %v950_v56 }
0x1490   :  { %v1225_v57 = vpop.eup %1224 }
0x1491   :  { %v952_v58 = vmul.f32 0.5, %v1225_v57 }
0x1493   :  { %v953_v59 = vadd.f32 0.5, %v952_v58 }
0x1495   :  { %v954_v60 = vsel %vm20_vm2, %v953_v59, %v1225_v57 }
0x1496   :  { %961 = vrot.lane.b32.xlu0 %v954_v60, %s1231_s18  ;;  %v959_v1 = vmul.f32 %v957_v63, %v954_v60 }
0x1508   :  { %v962_v61 = vpop.permute.xlu0 %961 }
0x1509   :  { %v964_v62 = vmul.f32 %v962_v61, %v954_v60 }
0x150b   :  { %966 = vrot.lane.b32.xlu0 %v964_v62, %s1231_s18 }
0x157d   :  { %v967_v2 = vpop.permute.xlu0 %966 }
0x157e   :  { %v969_v3 = vadd.f32 %v967_v2, %v959_v1 }
0x1580   :  { %1226 = vtanh.f32 %v969_v3 }
0x158a   :  { %v1227_v6 = vpop.eup %1226 }
0x158b   :  { %972 = vrot.lane.b32.xlu1 %v1227_v6, %s1231_s18 }
0x158f   :  { %982 = vrot.lane.b32.xlu1 %v969_v3, %s1232_s19 }
0x15fd   :  { %v973_v8 = vpop.permute.xlu1 %972 }
0x15fe   :  { %v975_v9 = vmul.f32 %v973_v8, %v954_v60 }
0x1600   :  { %977 = vrot.lane.b32.xlu0 %v975_v9, %s1233_s20 }
0x1601   :  { %v983_v10 = vpop.permute.xlu1 %982 }
0x1602   :  { %985 = vst.msk [vmem:[#allocation3] sm:$0xff] %vm15_vm0, %v983_v10 }
0x1672   :  { %v978_v11 = vpop.permute.xlu0 %977 }
0x1673   :  { %980 = vst.msk [vmem:[#allocation2] sm:$0xff] %vm15_vm0, %v978_v11  ;;  %1013 = vst.msk [vmem:[%s1482_s2 + $0x38] sm:$0xff] %vm15_vm0, %v978_v11 }

// kernel: rnn_forward.7
= control target key start
LH: loop header
LB: loop body
LE: loop exit
PB: predicated region body
PF: predicated region fallthrough
CT: control target
= control target key end

     0   :  { %vm23_vm0 = vcmask 261120   ;;  %v1328_v0 = vmov 0.0|0.0   ;;  %vm1329_vm1 = vmmov 0   ;;  %v1330_v4 = vmov 0.0   ;;  %s1331_s24 = smov 32   ;;  %s1332_s25 = smov 96   ;;  %s1581_s1 = inlined_call_operand.vmem [shape: f32[32,128], index: 1, kind: input, shape index: {}]   ;;  %s1582_s0 = inlined_call_operand.vmem [shape: f32[8,8,128], index: 0, kind: input, shape index: {}]   ;;  %s1583_s2 = inlined_call_operand.vmem [shape: f32[32,1], index: 2, kind: input, shape index: {}]   ;;  %s1584_s3 = inlined_call_operand.<no memory space> [shape: f32[1,1], index: 3, kind: input, shape index: {}]   ;;  %s1585_s4 = inlined_call_operand.vmem [shape: f32[8,1], index: 4, kind: output, shape index: {}]  }
   0x1   :  { %1236 = vmatprep.subr.bf16.mxu0 %v1328_v0  ;;  %v32_v1 = vld [vmem:[%s1581_s1] sm:$0xff]  ;;  %v33_v2 = vld [vmem:[%s1581_s1 + $0x8] sm:$0xff]  ;;  %v34_v3 = vld [vmem:[%s1581_s1 + $0x10] sm:$0xff]  ;;  %1145 = vmatprep.mubr.msk.f32.mxu0 %vm1329_vm1, %v1330_v4  ;;  %24 = vst.msk [vmem:[#allocation2] sm:$0xff] %vm23_vm0, %v1330_v4  ;;  %v26_v9 = vlaneseq  ;;  %s1333_s26 = smov 64   ;;  %vm1069_vm3 = vcmask 7168  }
   0x2   :  { %25 = vst.msk [vmem:[#allocation3] sm:$0xff] %vm23_vm0, %v1330_v4  ;;  %v1375_v5 = vpack.c.bf16 %v33_v2, %v32_v1  ;;  %v35_v6 = vld [vmem:[%s1581_s1 + $0x18] sm:$0xff]  ;;  %1242 = vmatprep.subr.bf16.mxu1 %v1328_v0  ;;  %1156 = vmatprep.mubr.msk.f32.mxu1 %vm1329_vm1, %v1330_v4  ;;  %v31_v11 = vld [vmem:[%s1582_s0] sm:$0xff]  ;;  %v1076_v35 = vld [vmem:[%s1582_s0 + $0x8] sm:$0xff] }
   0x3   :  { %v1384_v7 = vpack.c.bf16 %v35_v6, %v34_v3  ;;  %v1400_v10 = vand.u32 127, %v26_v9  ;;  %v1078_v58 = vld [vmem:[%s1582_s0 + $0x10] sm:$0xff] }
   0x4   :  { %1238 = vmatpush3.bf16.msra.mxu0 %v1375_v5  ;;  %1244 = vmatpush3.bf16.msra.mxu1 %v1375_v5 }
   0x5   :  { %1239 = vmatprep.subr.bf16.mxu0 %v1328_v0  ;;  %1245 = vmatprep.subr.bf16.mxu1 %v1328_v0  ;;  %vm28_vm2 = vcmp.lt.s32.totalorder %v1400_v10, 96  ;;  %v985_v10 = vld [vmem:[%s1583_s2] sm:$0xff] }
   0x8   :  { %1241 = vmatpush3.bf16.msra.mxu0 %v1384_v7  ;;  %v29_v8 = vld [vmem:[#allocation2] sm:$0xff]  ;;  %1247 = vmatpush3.bf16.msra.mxu1 %v1384_v7 }
   0x9   :  { %1248 = vmatprep.subr.bf16.mxu0 %v1328_v0  ;;  %1254 = vmatprep.subr.bf16.mxu1 %v1328_v0  ;;  %v30_v21 = vld [vmem:[#allocation3] sm:$0xff] }
   0xb   :  { %1146 = vmatmul.mubr.msk.f32.vlgmr.msra.gmra.mrb[0].mxu0 %vm23_vm0, %v29_v8 }
   0xc   :  { %1250 = vmatpush3.bf16.msra.mxu0 %v1375_v5  ;;  %1167 = vmatprep.mubr.msk.f32.mxu0 %vm1329_vm1, %v1330_v4 }
   0xd   :  { %1251 = vmatprep.subr.bf16.mxu0 %v1328_v0 }
  0x10   :  { %1253 = vmatpush3.bf16.msra.mxu0 %v1384_v7 }
  0x11   :  { %1260 = vmatprep.subr.bf16.mxu0 %v1328_v0 }
  0xde   :  { %v106_v12 = vpop.f32.mrb[0].mxu0 }
  0xdf   :  { %v110_v13 = vadd.f32 %v106_v12, %v31_v11  ;;  %v1147_v14 = vpop.f32.mrb[1].mxu0 }
  0xe1   :  { %v111_v15 = vmul.f32 0.5, %v110_v13 }
  0xe3   :  { %v112_v16 = vsel %vm28_vm2, %v111_v15, %v110_v13 }
  0xe4   :  { %1296 = vtanh.f32 %v112_v16 }
  0xee   :  { %v1297_v17 = vpop.eup %1296 }
  0xef   :  { %v114_v18 = vmul.f32 0.5, %v1297_v17 }
  0xf1   :  { %v115_v19 = vadd.f32 0.5, %v114_v18 }
  0xf3   :  { %v116_v20 = vsel %vm28_vm2, %v115_v19, %v1297_v17 }
  0xf4   :  { %123 = vrot.lane.b32.xlu0 %v116_v20, %s1331_s24 }
  0xf8   :  { %118 = vrot.lane.b32.xlu0 %v30_v21, %s1331_s24 }
 0x166   :  { %v124_v22 = vpop.permute.xlu0 %123 }
 0x167   :  { %v126_v23 = vmul.f32 %v124_v22, %v116_v20  ;;  %v1080_v22 = vld [vmem:[%s1582_s0 + $0x18] sm:$0xff] }
 0x169   :  { %128 = vrot.lane.b32.xlu1 %v126_v23, %s1331_s24 }
 0x16a   :  { %v119_v24 = vpop.permute.xlu0 %118 }
 0x16b   :  { %v121_v25 = vmul.f32 %v119_v24, %v116_v20 }
 0x1db   :  { %v129_v26 = vpop.permute.xlu1 %128 }
 0x1dc   :  { %v131_v27 = vadd.f32 %v129_v26, %v121_v25 }
 0x1de   :  { %1298 = vtanh.f32 %v131_v27 }
 0x1e8   :  { %v1299_v28 = vpop.eup %1298 }
 0x1e9   :  { %134 = vrot.lane.b32.xlu1 %v1299_v28, %s1331_s24 }
 0x1ed   :  { %144 = vrot.lane.b32.xlu1 %v131_v27, %s1332_s25 }
 0x25b   :  { %v135_v29 = vpop.permute.xlu1 %134 }
 0x25c   :  { %v137_v30 = vmul.f32 %v135_v29, %v116_v20 }
 0x25e   :  { %139 = vrot.lane.b32.xlu0 %v137_v30, %s1333_s26 }
 0x25f   :  { %v145_v31 = vpop.permute.xlu1 %144 }
 0x260   :  { %147 = vst.msk [vmem:[#allocation3] sm:$0xff] %vm23_vm0, %v145_v31 }
 0x267   :  { %v149_v32 = vld [vmem:[#allocation3] sm:$0xff] }
 0x268   :  { %237 = vrot.lane.b32.xlu1 %v149_v32, %s1331_s24 }
 0x2d0   :  { %v140_v33 = vpop.permute.xlu0 %139 }
 0x2d1   :  { %142 = vst.msk [vmem:[#allocation2] sm:$0xff] %vm23_vm0, %v140_v33 }
 0x2d8   :  { %v148_v34 = vld [vmem:[#allocation2] sm:$0xff] }
 0x2d9   :  { %1157 = vmatmul.mubr.msk.f32.vlgmr.msra.gmra.mrb[0].mxu1 %vm23_vm0, %v148_v34 }
 0x2da   :  { %1256 = vmatpush3.bf16.msra.mxu1 %v1375_v5  ;;  %1178 = vmatprep.mubr.msk.f32.mxu1 %vm1329_vm1, %v1330_v4  ;;  %v238_v47 = vpop.permute.xlu1 %237 }
 0x2db   :  { %1257 = vmatprep.subr.bf16.mxu1 %v1328_v0 }
 0x2de   :  { %1259 = vmatpush3.bf16.msra.mxu1 %v1384_v7 }
 0x2df   :  { %1266 = vmatprep.subr.bf16.mxu1 %v1328_v0 }
 0x3ac   :  { %v225_v36 = vpop.f32.mrb[0].mxu1 }
 0x3ad   :  { %v229_v37 = vadd.f32 %v1076_v35, %v225_v36  ;;  %v1158_v38 = vpop.f32.mrb[1].mxu1 }
 0x3af   :  { %v230_v39 = vmul.f32 0.5, %v229_v37 }
 0x3b1   :  { %v231_v40 = vsel %vm28_vm2, %v230_v39, %v229_v37 }
 0x3b2   :  { %1300 = vtanh.f32 %v231_v40 }
 0x3bc   :  { %v1301_v41 = vpop.eup %1300 }
 0x3bd   :  { %v233_v42 = vmul.f32 0.5, %v1301_v41 }
 0x3bf   :  { %v234_v43 = vadd.f32 0.5, %v233_v42 }
 0x3c1   :  { %v235_v44 = vsel %vm28_vm2, %v234_v43, %v1301_v41 }
 0x3c2   :  { %242 = vrot.lane.b32.xlu0 %v235_v44, %s1331_s24  ;;  %v240_v48 = vmul.f32 %v238_v47, %v235_v44 }
 0x434   :  { %v243_v45 = vpop.permute.xlu0 %242 }
 0x435   :  { %v245_v46 = vmul.f32 %v243_v45, %v235_v44  ;;  %v1082_v45 = vld [vmem:[%s1582_s0 + $0x20] sm:$0xff] }
 0x437   :  { %247 = vrot.lane.b32.xlu0 %v245_v46, %s1331_s24 }
 0x4a9   :  { %v248_v49 = vpop.permute.xlu0 %247 }
 0x4aa   :  { %v250_v50 = vadd.f32 %v248_v49, %v240_v48 }
 0x4ac   :  { %1302 = vtanh.f32 %v250_v50 }
 0x4b6   :  { %v1303_v51 = vpop.eup %1302 }
 0x4b7   :  { %253 = vrot.lane.b32.xlu1 %v1303_v51, %s1331_s24 }
 0x4bb   :  { %263 = vrot.lane.b32.xlu1 %v250_v50, %s1332_s25 }
 0x529   :  { %v254_v52 = vpop.permute.xlu1 %253 }
 0x52a   :  { %v256_v53 = vmul.f32 %v254_v52, %v235_v44 }
 0x52c   :  { %258 = vrot.lane.b32.xlu0 %v256_v53, %s1333_s26 }
 0x52d   :  { %v264_v54 = vpop.permute.xlu1 %263 }
 0x52e   :  { %266 = vst.msk [vmem:[#allocation3] sm:$0xff] %vm23_vm0, %v264_v54 }
 0x535   :  { %v268_v55 = vld [vmem:[#allocation3] sm:$0xff] }
 0x536   :  { %356 = vrot.lane.b32.xlu1 %v268_v55, %s1331_s24 }
 0x59e   :  { %v259_v56 = vpop.permute.xlu0 %258 }
 0x59f   :  { %261 = vst.msk [vmem:[#allocation2] sm:$0xff] %vm23_vm0, %v259_v56 }
 0x5a6   :  { %v267_v57 = vld [vmem:[#allocation2] sm:$0xff] }
 0x5a7   :  { %1168 = vmatmul.mubr.msk.f32.vlgmr.msra.gmra.mrb[2].mxu0 %vm23_vm0, %v267_v57 }
 0x5a8   :  { %1262 = vmatpush3.bf16.msra.mxu0 %v1375_v5  ;;  %1189 = vmatprep.mubr.msk.f32.mxu0 %vm1329_vm1, %v1330_v4  ;;  %v357_v11 = vpop.permute.xlu1 %356 }
 0x5a9   :  { %1263 = vmatprep.subr.bf16.mxu0 %v1328_v0 }
 0x5ac   :  { %1265 = vmatpush3.bf16.msra.mxu0 %v1384_v7 }
 0x5ad   :  { %1272 = vmatprep.subr.bf16.mxu0 %v1328_v0 }
 0x67a   :  { %v344_v59 = vpop.f32.mrb[2].mxu0 }
 0x67b   :  { %v348_v60 = vadd.f32 %v1078_v58, %v344_v59  ;;  %v1169_v61 = vpop.f32.mrb[3].mxu0 }
 0x67d   :  { %v349_v62 = vmul.f32 0.5, %v348_v60 }
 0x67f   :  { %v350_v63 = vsel %vm28_vm2, %v349_v62, %v348_v60 }
 0x680   :  { %1304 = vtanh.f32 %v350_v63 }
 0x68a   :  { %v1305_v1 = vpop.eup %1304 }
 0x68b   :  { %v352_v2 = vmul.f32 0.5, %v1305_v1 }
 0x68d   :  { %v353_v3 = vadd.f32 0.5, %v352_v2 }
 0x68f   :  { %v354_v6 = vsel %vm28_vm2, %v353_v3, %v1305_v1 }
 0x690   :  { %361 = vrot.lane.b32.xlu0 %v354_v6, %s1331_s24  ;;  %v359_v12 = vmul.f32 %v357_v11, %v354_v6 }
 0x702   :  { %v362_v8 = vpop.permute.xlu0 %361 }
 0x703   :  { %v364_v9 = vmul.f32 %v362_v8, %v354_v6  ;;  %v1084_v8 = vld [vmem:[%s1582_s0 + $0x28] sm:$0xff] }
 0x705   :  { %366 = vrot.lane.b32.xlu0 %v364_v9, %s1331_s24 }
 0x777   :  { %v367_v13 = vpop.permute.xlu0 %366 }
 0x778   :  { %v369_v14 = vadd.f32 %v367_v13, %v359_v12 }
 0x77a   :  { %1306 = vtanh.f32 %v369_v14 }
 0x784   :  { %v1307_v15 = vpop.eup %1306 }
 0x785   :  { %372 = vrot.lane.b32.xlu1 %v1307_v15, %s1331_s24 }
 0x789   :  { %382 = vrot.lane.b32.xlu1 %v369_v14, %s1332_s25 }
 0x7f7   :  { %v373_v16 = vpop.permute.xlu1 %372 }
 0x7f8   :  { %v375_v17 = vmul.f32 %v373_v16, %v354_v6 }
 0x7fa   :  { %377 = vrot.lane.b32.xlu0 %v375_v17, %s1333_s26 }
 0x7fb   :  { %v383_v18 = vpop.permute.xlu1 %382 }
 0x7fc   :  { %385 = vst.msk [vmem:[#allocation3] sm:$0xff] %vm23_vm0, %v383_v18 }
 0x803   :  { %v387_v19 = vld [vmem:[#allocation3] sm:$0xff] }
 0x804   :  { %475 = vrot.lane.b32.xlu1 %v387_v19, %s1331_s24 }
 0x86c   :  { %v378_v20 = vpop.permute.xlu0 %377 }
 0x86d   :  { %380 = vst.msk [vmem:[#allocation2] sm:$0xff] %vm23_vm0, %v378_v20 }
 0x874   :  { %v386_v21 = vld [vmem:[#allocation2] sm:$0xff] }
 0x875   :  { %1179 = vmatmul.mubr.msk.f32.vlgmr.msra.gmra.mrb[2].mxu1 %vm23_vm0, %v386_v21 }
 0x876   :  { %1268 = vmatpush3.bf16.msra.mxu1 %v1375_v5  ;;  %1200 = vmatprep.mubr.msk.f32.mxu1 %vm1329_vm1, %v1330_v4  ;;  %v476_v34 = vpop.permute.xlu1 %475 }
 0x877   :  { %1269 = vmatprep.subr.bf16.mxu1 %v1328_v0 }
 0x87a   :  { %1271 = vmatpush3.bf16.msra.mxu1 %v1384_v7 }
 0x87b   :  { %1278 = vmatprep.subr.bf16.mxu1 %v1328_v0 }
 0x948   :  { %v463_v23 = vpop.f32.mrb[2].mxu1 }
 0x949   :  { %v467_v24 = vadd.f32 %v1080_v22, %v463_v23  ;;  %v1180_v25 = vpop.f32.mrb[3].mxu1 }
 0x94b   :  { %v468_v26 = vmul.f32 0.5, %v467_v24 }
 0x94d   :  { %v469_v27 = vsel %vm28_vm2, %v468_v26, %v467_v24 }
 0x94e   :  { %1308 = vtanh.f32 %v469_v27 }
 0x958   :  { %v1309_v28 = vpop.eup %1308 }
 0x959   :  { %v471_v29 = vmul.f32 0.5, %v1309_v28 }
 0x95b   :  { %v472_v30 = vadd.f32 0.5, %v471_v29 }
 0x95d   :  { %v473_v31 = vsel %vm28_vm2, %v472_v30, %v1309_v28  ;;  %v1086_v30 = vld [vmem:[%s1582_s0 + $0x30] sm:$0xff] }
 0x95e   :  { %480 = vrot.lane.b32.xlu0 %v473_v31, %s1331_s24  ;;  %v478_v35 = vmul.f32 %v476_v34, %v473_v31 }
 0x9d0   :  { %v481_v32 = vpop.permute.xlu0 %480 }
 0x9d1   :  { %v483_v33 = vmul.f32 %v481_v32, %v473_v31 }
 0x9d3   :  { %485 = vrot.lane.b32.xlu0 %v483_v33, %s1331_s24 }
 0xa45   :  { %v486_v36 = vpop.permute.xlu0 %485 }
 0xa46   :  { %v488_v37 = vadd.f32 %v486_v36, %v478_v35 }
 0xa48   :  { %1310 = vtanh.f32 %v488_v37 }
 0xa52   :  { %v1311_v38 = vpop.eup %1310 }
 0xa53   :  { %491 = vrot.lane.b32.xlu1 %v1311_v38, %s1331_s24 }
 0xa57   :  { %501 = vrot.lane.b32.xlu1 %v488_v37, %s1332_s25 }
 0xac5   :  { %v492_v39 = vpop.permute.xlu1 %491 }
 0xac6   :  { %v494_v40 = vmul.f32 %v492_v39, %v473_v31 }
 0xac8   :  { %496 = vrot.lane.b32.xlu0 %v494_v40, %s1333_s26 }
 0xac9   :  { %v502_v41 = vpop.permute.xlu1 %501 }
 0xaca   :  { %504 = vst.msk [vmem:[#allocation3] sm:$0xff] %vm23_vm0, %v502_v41 }
 0xad1   :  { %v506_v42 = vld [vmem:[#allocation3] sm:$0xff] }
 0xad2   :  { %594 = vrot.lane.b32.xlu1 %v506_v42, %s1331_s24 }
 0xb3a   :  { %v497_v43 = vpop.permute.xlu0 %496 }
 0xb3b   :  { %499 = vst.msk [vmem:[#allocation2] sm:$0xff] %vm23_vm0, %v497_v43 }
 0xb42   :  { %v505_v44 = vld [vmem:[#allocation2] sm:$0xff] }
 0xb43   :  { %1190 = vmatmul.mubr.msk.f32.vlgmr.msra.gmra.mrb[4].mxu0 %vm23_vm0, %v505_v44 }
 0xb44   :  { %1274 = vmatpush3.bf16.msra.mxu0 %v1375_v5  ;;  %1211 = vmatprep.mubr.msk.f32.mxu0 %vm1329_vm1, %v1330_v4  ;;  %v595_v57 = vpop.permute.xlu1 %594 }
 0xb45   :  { %1275 = vmatprep.subr.bf16.mxu0 %v1328_v0 }
 0xb48   :  { %1277 = vmatpush3.bf16.msra.mxu0 %v1384_v7 }
 0xb49   :  { %1284 = vmatprep.subr.bf16.mxu0 %v1328_v0 }
 0xc16   :  { %v582_v46 = vpop.f32.mrb[4].mxu0 }
 0xc17   :  { %v586_v47 = vadd.f32 %v1082_v45, %v582_v46  ;;  %v1191_v48 = vpop.f32.mrb[5].mxu0 }
 0xc19   :  { %v587_v49 = vmul.f32 0.5, %v586_v47 }
 0xc1b   :  { %v588_v50 = vsel %vm28_vm2, %v587_v49, %v586_v47 }
 0xc1c   :  { %1312 = vtanh.f32 %v588_v50 }
 0xc26   :  { %v1313_v51 = vpop.eup %1312 }
 0xc27   :  { %v590_v52 = vmul.f32 0.5, %v1313_v51 }
 0xc29   :  { %v591_v53 = vadd.f32 0.5, %v590_v52  ;;  %v1088_v52 = vld [vmem:[%s1582_s0 + $0x38] sm:$0xff] }
 0xc2b   :  { %v592_v54 = vsel %vm28_vm2, %v591_v53, %v1313_v51 }
 0xc2c   :  { %599 = vrot.lane.b32.xlu0 %v592_v54, %s1331_s24  ;;  %v597_v58 = vmul.f32 %v595_v57, %v592_v54 }
 0xc9e   :  { %v600_v55 = vpop.permute.xlu0 %599 }
 0xc9f   :  { %v602_v56 = vmul.f32 %v600_v55, %v592_v54 }
 0xca1   :  { %604 = vrot.lane.b32.xlu0 %v602_v56, %s1331_s24 }
 0xd13   :  { %v605_v59 = vpop.permute.xlu0 %604 }
 0xd14   :  { %v607_v60 = vadd.f32 %v605_v59, %v597_v58 }
 0xd16   :  { %1314 = vtanh.f32 %v607_v60 }
 0xd20   :  { %v1315_v61 = vpop.eup %1314 }
 0xd21   :  { %610 = vrot.lane.b32.xlu1 %v1315_v61, %s1331_s24 }
 0xd25   :  { %620 = vrot.lane.b32.xlu1 %v607_v60, %s1332_s25 }
 0xd93   :  { %v611_v62 = vpop.permute.xlu1 %610 }
 0xd94   :  { %v613_v63 = vmul.f32 %v611_v62, %v592_v54 }
 0xd96   :  { %615 = vrot.lane.b32.xlu0 %v613_v63, %s1333_s26 }
 0xd97   :  { %v621_v1 = vpop.permute.xlu1 %620 }
 0xd98   :  { %623 = vst.msk [vmem:[#allocation3] sm:$0xff] %vm23_vm0, %v621_v1 }
 0xd9f   :  { %v625_v2 = vld [vmem:[#allocation3] sm:$0xff] }
 0xda0   :  { %713 = vrot.lane.b32.xlu1 %v625_v2, %s1331_s24 }
 0xe08   :  { %v616_v3 = vpop.permute.xlu0 %615 }
 0xe09   :  { %618 = vst.msk [vmem:[#allocation2] sm:$0xff] %vm23_vm0, %v616_v3 }
 0xe10   :  { %v624_v6 = vld [vmem:[#allocation2] sm:$0xff] }
 0xe11   :  { %1201 = vmatmul.mubr.msk.f32.vlgmr.msra.gmra.mrb[4].mxu1 %vm23_vm0, %v624_v6 }
 0xe12   :  { %1280 = vmatpush3.bf16.msra.mxu1 %v1375_v5  ;;  %1222 = vmatprep.mubr.msk.f32.mxu1 %vm1329_vm1, %v1330_v4  ;;  %v714_v19 = vpop.permute.xlu1 %713 }
 0xe13   :  { %1281 = vmatprep.subr.bf16.mxu1 %v1328_v0 }
 0xe16   :  { %1283 = vmatpush3.bf16.msra.mxu1 %v1384_v7 }
 0xee4   :  { %v701_v9 = vpop.f32.mrb[4].mxu1 }
 0xee5   :  { %v705_v11 = vadd.f32 %v1084_v8, %v701_v9  ;;  %v1202_v12 = vpop.f32.mrb[5].mxu1  ;;  %v986_v9 = vld [vmem:[%s1583_s2 + $0x8] sm:$0xff] }
 0xee6   :  { %v987_v12 = vld [vmem:[%s1583_s2 + $0x10] sm:$0xff] }
 0xee7   :  { %v706_v13 = vmul.f32 0.5, %v705_v11 }
 0xee9   :  { %v707_v14 = vsel %vm28_vm2, %v706_v13, %v705_v11  ;;  %v1285_v11 = vpack.c.bf16 %v986_v9, %v985_v10  ;;  %v988_v13 = vld [vmem:[%s1583_s2 + $0x18] sm:$0xff] }
 0xeea   :  { %1316 = vtanh.f32 %v707_v14  ;;  %v1288_v14 = vpack.c.bf16 %v988_v13, %v987_v12 }
 0xef4   :  { %v1317_v5 = vpop.eup %1316 }
 0xef5   :  { %v709_v15 = vmul.f32 0.5, %v1317_v5 }
 0xef7   :  { %v710_v16 = vadd.f32 0.5, %v709_v15 }
 0xef9   :  { %v711_v17 = vsel %vm28_vm2, %v710_v16, %v1317_v5  ;;  %v9_v5 = vstv %s1584_s3 }
 0xefa   :  { %718 = vrot.lane.b32.xlu0 %v711_v17, %s1331_s24  ;;  %v716_v20 = vmul.f32 %v714_v19, %v711_v17  ;;  %10 = vst [vmem:[#allocation4] sm:$0x1] %v9_v5 }
 0xf6c   :  { %v719_v7 = vpop.permute.xlu0 %718 }
 0xf6d   :  { %v721_v18 = vmul.f32 %v719_v7, %v711_v17 }
 0xf6f   :  { %723 = vrot.lane.b32.xlu0 %v721_v18, %s1331_s24 }
 0xfe1   :  { %v724_v21 = vpop.permute.xlu0 %723 }
 0xfe2   :  { %v726_v22 = vadd.f32 %v724_v21, %v716_v20 }
 0xfe4   :  { %1318 = vtanh.f32 %v726_v22 }
 0xfee   :  { %v1319_v23 = vpop.eup %1318 }
 0xfef   :  { %729 = vrot.lane.b32.xlu1 %v1319_v23, %s1331_s24 }
 0xff3   :  { %739 = vrot.lane.b32.xlu1 %v726_v22, %s1332_s25 }
0x1061   :  { %v730_v24 = vpop.permute.xlu1 %729 }
0x1062   :  { %v732_v25 = vmul.f32 %v730_v24, %v711_v17 }
0x1064   :  { %734 = vrot.lane.b32.xlu0 %v732_v25, %s1333_s26 }
0x1065   :  { %v740_v26 = vpop.permute.xlu1 %739 }
0x1066   :  { %742 = vst.msk [vmem:[#allocation3] sm:$0xff] %vm23_vm0, %v740_v26 }
0x106d   :  { %v744_v27 = vld [vmem:[#allocation3] sm:$0xff] }
0x106e   :  { %832 = vrot.lane.b32.xlu1 %v744_v27, %s1331_s24 }
0x10d6   :  { %v735_v28 = vpop.permute.xlu0 %734 }
0x10d7   :  { %737 = vst.msk [vmem:[#allocation2] sm:$0xff] %vm23_vm0, %v735_v28 }
0x10de   :  { %v743_v29 = vld [vmem:[#allocation2] sm:$0xff] }
0x10df   :  { %1212 = vmatmul.mubr.msk.f32.vlgmr.msra.gmra.mrb[6].mxu0 %vm23_vm0, %v743_v29 }
0x10e0   :  { %1233 = vmatprep.mubr.msk.f32.mxu0 %vm1329_vm1, %v1330_v4  ;;  %v833_v41 = vpop.permute.xlu1 %832  ;;  %1286 = vmatpush3.bf16.msra.mxu0 %v1285_v11 }
0x10e1   :  { %1287 = vmatprep.subr.bf16.mxu0 %v1328_v0  ;;  %v1090_v0 = vld [vmem:[#allocation4] ss:$0 sm:$0xff] }
0x10e4   :  { %1289 = vmatpush3.bf16.msra.mxu0 %v1288_v14 }
0x11b2   :  { %v820_v31 = vpop.f32.mrb[6].mxu0 }
0x11b3   :  { %v824_v32 = vadd.f32 %v1086_v30, %v820_v31  ;;  %v1213_v33 = vpop.f32.mrb[7].mxu0 }
0x11b5   :  { %v825_v34 = vmul.f32 0.5, %v824_v32 }
0x11b7   :  { %v826_v35 = vsel %vm28_vm2, %v825_v34, %v824_v32 }
0x11b8   :  { %1320 = vtanh.f32 %v826_v35 }
0x11c2   :  { %v1321_v36 = vpop.eup %1320 }
0x11c3   :  { %v828_v37 = vmul.f32 0.5, %v1321_v36 }
0x11c5   :  { %v829_v38 = vadd.f32 0.5, %v828_v37 }
0x11c7   :  { %v830_v39 = vsel %vm28_vm2, %v829_v38, %v1321_v36 }
0x11c8   :  { %837 = vrot.lane.b32.xlu0 %v830_v39, %s1331_s24  ;;  %v835_v42 = vmul.f32 %v833_v41, %v830_v39 }
0x123a   :  { %v838_v4 = vpop.permute.xlu0 %837 }
0x123b   :  { %v840_v40 = vmul.f32 %v838_v4, %v830_v39 }
0x123d   :  { %842 = vrot.lane.b32.xlu0 %v840_v40, %s1331_s24 }
0x12af   :  { %v843_v43 = vpop.permute.xlu0 %842 }
0x12b0   :  { %v845_v44 = vadd.f32 %v843_v43, %v835_v42 }
0x12b2   :  { %1322 = vtanh.f32 %v845_v44 }
0x12bc   :  { %v1323_v45 = vpop.eup %1322 }
0x12bd   :  { %848 = vrot.lane.b32.xlu1 %v1323_v45, %s1331_s24 }
0x12c1   :  { %858 = vrot.lane.b32.xlu1 %v845_v44, %s1332_s25 }
0x132f   :  { %v849_v46 = vpop.permute.xlu1 %848 }
0x1330   :  { %v851_v47 = vmul.f32 %v849_v46, %v830_v39 }
0x1332   :  { %853 = vrot.lane.b32.xlu0 %v851_v47, %s1333_s26 }
0x1333   :  { %v859_v48 = vpop.permute.xlu1 %858 }
0x1334   :  { %861 = vst.msk [vmem:[#allocation3] sm:$0xff] %vm23_vm0, %v859_v48 }
0x133b   :  { %v863_v49 = vld [vmem:[#allocation3] sm:$0xff] }
0x133c   :  { %951 = vrot.lane.b32.xlu1 %v863_v49, %s1331_s24 }
0x13a4   :  { %v854_v50 = vpop.permute.xlu0 %853 }
0x13a5   :  { %856 = vst.msk [vmem:[#allocation2] sm:$0xff] %vm23_vm0, %v854_v50 }
0x13ac   :  { %v862_v51 = vld [vmem:[#allocation2] sm:$0xff] }
0x13ad   :  { %1223 = vmatmul.mubr.msk.f32.vlgmr.msra.gmra.mrb[6].mxu1 %vm23_vm0, %v862_v51 }
0x13ae   :  { %v952_v1 = vpop.permute.xlu1 %951 }
0x1480   :  { %v939_v53 = vpop.f32.mrb[6].mxu1 }
0x1481   :  { %v943_v54 = vadd.f32 %v1088_v52, %v939_v53  ;;  %v1224_v55 = vpop.f32.mrb[7].mxu1 }
0x1483   :  { %v944_v56 = vmul.f32 0.5, %v943_v54 }
0x1485   :  { %v945_v57 = vsel %vm28_vm2, %v944_v56, %v943_v54 }
0x1486   :  { %1324 = vtanh.f32 %v945_v57 }
0x1490   :  { %v1325_v58 = vpop.eup %1324 }
0x1491   :  { %v947_v59 = vmul.f32 0.5, %v1325_v58 }
0x1493   :  { %v948_v60 = vadd.f32 0.5, %v947_v59 }
0x1495   :  { %v949_v61 = vsel %vm28_vm2, %v948_v60, %v1325_v58 }
0x1496   :  { %956 = vrot.lane.b32.xlu0 %v949_v61, %s1331_s24  ;;  %v954_v2 = vmul.f32 %v952_v1, %v949_v61 }
0x1508   :  { %v957_v62 = vpop.permute.xlu0 %956 }
0x1509   :  { %v959_v63 = vmul.f32 %v957_v62, %v949_v61 }
0x150b   :  { %961 = vrot.lane.b32.xlu0 %v959_v63, %s1331_s24 }
0x157d   :  { %v962_v3 = vpop.permute.xlu0 %961 }
0x157e   :  { %v964_v6 = vadd.f32 %v962_v3, %v954_v2 }
0x1580   :  { %1326 = vtanh.f32 %v964_v6 }
0x158a   :  { %v1327_v8 = vpop.eup %1326 }
0x158b   :  { %967 = vrot.lane.b32.xlu1 %v1327_v8, %s1331_s24 }
0x158f   :  { %977 = vrot.lane.b32.xlu1 %v964_v6, %s1332_s25 }
0x15fd   :  { %v968_v15 = vpop.permute.xlu1 %967 }
0x15fe   :  { %v970_v16 = vmul.f32 %v968_v15, %v949_v61 }
0x1600   :  { %972 = vrot.lane.b32.xlu0 %v970_v16, %s1333_s26 }
0x1601   :  { %v978_v17 = vpop.permute.xlu1 %977 }
0x1602   :  { %980 = vst.msk [vmem:[#allocation3] sm:$0xff] %vm23_vm0, %v978_v17 }
0x1672   :  { %v973_v7 = vpop.permute.xlu0 %972 }
0x1673   :  { %975 = vst.msk [vmem:[#allocation2] sm:$0xff] %vm23_vm0, %v973_v7 }
0x167a   :  { %v984_v18 = vld [vmem:[#allocation2] sm:$0xff] }
0x167b   :  { %1234 = vmatmul.mubr.msk.f32.vlgmr.msra.gmra.mrb[8].mxu0 %vm23_vm0, %v984_v18 }
0x174e   :  { %v1065_v19 = vpop.f32.mrb[8].mxu0 }
0x174f   :  { %v1066_v20 = vadd.f32 %v1090_v0, %v1065_v19  ;;  %v1235_v21 = vpop.f32.mrb[9].mxu0 }
0x1751   :  { %1070 = vst.msk [vmem:[%s1585_s4] sm:$0xff] %vm1069_vm3, %v1066_v20 }

</bundles_post_ra>
